<compile_context>
chip_gen: v6e
topology: v6e:2x2x1
jax: 0.10.0
libtpu: 0.0.40
codegen_flags: <defaults>
</compile_context>

<pallas_src>
import jax
import jax.numpy as jnp
from jax.experimental import pallas as pl
from jax.experimental.pallas import tpu as pltpu

LN_EPS = 1e-5

# Padded (lane-aligned) hidden sizes.
H1, H2, H3 = 512, 512, 384       # true sizes 400, 400, 300 zero-padded


def critic_kernel(s_ref, a_ref,
                  gs_ref, ga_ref, bs_ref, ba_ref,
                  w1s_ref, w1a_ref, b1_ref,
                  w2_ref, b2_ref,
                  w3_ref, b3_ref,
                  w4_ref, b4_ref,
                  o_ref):
    # --- LayerNorm over the (virtual) concat [state, action], two-pass -----
    s = s_ref[...].astype(jnp.float32)                      # (bb, obs)
    a = a_ref[...].astype(jnp.float32)                      # (bb, act)
    inv_d = 1.0 / (s.shape[-1] + a.shape[-1])
    mean = (jnp.sum(s, axis=-1, keepdims=True) +
            jnp.sum(a, axis=-1, keepdims=True)) * inv_d
    sc = s - mean
    ac = a - mean
    var = (jnp.sum(sc * sc, axis=-1, keepdims=True) +
           jnp.sum(ac * ac, axis=-1, keepdims=True)) * inv_d
    rstd = jax.lax.rsqrt(var + LN_EPS)
    hs = jnp.tanh(sc * rstd * gs_ref[...] + bs_ref[...])    # (bb, obs)
    ha = jnp.tanh(ac * rstd * ga_ref[...] + ba_ref[...])    # (bb, act)

    # --- layer 1: split matmul (state part + action part), no concat -------
    y1 = (jnp.dot(hs.astype(w1s_ref.dtype), w1s_ref[...],
                  preferred_element_type=jnp.float32) +
          jnp.dot(ha.astype(w1a_ref.dtype), w1a_ref[...],
                  preferred_element_type=jnp.float32))
    h1 = jnp.maximum(y1 + b1_ref[...], 0.0)                 # (bb, 512)

    def dense_relu(x, w_ref, b_ref):
        y = jnp.dot(x.astype(w_ref.dtype), w_ref[...],
                    preferred_element_type=jnp.float32)
        return jnp.maximum(y + b_ref[...], 0.0)

    h2 = dense_relu(h1, w2_ref, b2_ref)                     # (bb, 512)
    h3 = dense_relu(h2, w3_ref, b3_ref)                     # (bb, 384)

    # --- final 384 -> 1 as VPU multiply + cross-lane reduce (no MXU) --------
    w4 = w4_ref[...].astype(jnp.float32)                    # (1, 384) row
    out_col = jnp.sum(h3 * w4, axis=-1, keepdims=True) + b4_ref[...]   # (bb, 1)
    # Lane-dense store: transpose to a (1, bb) row (XLU is idle here).
    o_ref[0] = jnp.transpose(out_col).astype(o_ref.dtype)   # o_ref: (1, 1, bb)


def init_critic_params(key, observations, actions):
    """Deterministic parameter init mirroring the PyTorch module.

    Hidden dims are zero-padded to (512, 512, 384); weights stored bf16,
    biases f32.  Zero padding does not change the forward result.  Layer-1
    weights and LayerNorm affine params are stored split (state / action) so
    the kernel never materializes the concatenation.
    """
    d_in = observations + actions
    dims = [(d_in, 400), (400, 400), (400, 300), (300, 1)]
    pdims = [(d_in, H1), (H1, H2), (H2, H3), (H3, 1)]
    keys = jax.random.split(key, 2 * len(dims))

    params = {
        # LayerNorm affine (PyTorch default init: weight=1, bias=0).
        "ln_gamma_s": jnp.ones((1, observations), jnp.float32),
        "ln_gamma_a": jnp.ones((1, actions), jnp.float32),
        "ln_beta_s": jnp.zeros((1, observations), jnp.float32),
        "ln_beta_a": jnp.zeros((1, actions), jnp.float32),
    }
    for i, ((fi, fo), (pfi, pfo)) in enumerate(zip(dims, pdims)):
        # Weights: uniform(-0.003, 0.003) as in the module's __init__.
        w = jax.random.uniform(keys[2 * i], (fi, fo),
                               jnp.float32, -0.003, 0.003)
        # Biases: PyTorch Linear default uniform(-1/sqrt(fan_in), 1/sqrt(fan_in)).
        bound = 1.0 / (fi ** 0.5)
        b = jax.random.uniform(keys[2 * i + 1], (1, fo),
                               jnp.float32, -bound, bound)
        wp = jnp.zeros((pfi, pfo), jnp.float32).at[:fi, :fo].set(w)
        bp = jnp.zeros((1, pfo), jnp.float32).at[:, :fo].set(b)
        if i == 0:
            params["w1s"] = wp[:observations].astype(jnp.bfloat16)   # (obs, 512)
            params["w1a"] = wp[observations:].astype(jnp.bfloat16)   # (act, 512)
            params["b1"] = bp
        elif i == 3:
            # Final layer stored as a lane-dense row (1, H3) for the VPU reduce.
            params["w4"] = wp.T.astype(jnp.bfloat16)                 # (1, 384)
            params["b4"] = bp                                        # (1, 1)
        else:
            params[f"w{i + 1}"] = wp.astype(jnp.bfloat16)
            params[f"b{i + 1}"] = bp
    return params


def critic_forward(state, action, params, *, block_b=1024):
    state = state.astype(jnp.float32)
    action = action.astype(jnp.float32)
    B, obs = state.shape
    Ba, act = action.shape
    assert B == Ba

    def ceil_to(x, m):
        return ((x + m - 1) // m) * m

    if B <= 256:
        # Single tile; just sublane-align (per-call overhead dominates anyway).
        bb = ceil_to(max(B, 8), 8)
    else:
        # Multiple of 256 (full MXU M-tiles), but keep >= 2 grid steps so both
        # v7x TensorCores get work; v5e/v6e simply get bigger pipelined tiles.
        bb = min(ceil_to(block_b, 256), ceil_to(pl.cdiv(B, 2), 256))
    grid_b = pl.cdiv(B, bb)       # ragged last tile allowed (no jnp.pad)

    def resident(shape):
        # Full-array block with a constant index_map -> weights stay
        # VMEM-resident across the batch loop (no re-DMA).
        # TODO(synk): pipeline_mode=pl.Buffered(1) would drop the dead second
        # buffer (~1 MiB); omitted since VMEM is nowhere near any limit here.
        return pl.BlockSpec(shape, lambda i: (0,) * len(shape))

    in_specs = [
        pl.BlockSpec((bb, obs), lambda i: (i, 0)),       # state tile
        pl.BlockSpec((bb, act), lambda i: (i, 0)),       # action tile
        resident((1, obs)), resident((1, act)),          # ln gamma (split)
        resident((1, obs)), resident((1, act)),          # ln beta  (split)
        resident((obs, H1)), resident((act, H1)), resident((1, H1)),   # layer 1
        resident((H1, H2)), resident((1, H2)),           # layer 2
        resident((H2, H3)), resident((1, H3)),           # layer 3
        resident((1, H3)), resident((1, 1)),             # layer 4 row / bias
    ]
    # Lane-dense output: one (1, bb) row per grid step.
    out_spec = pl.BlockSpec((1, 1, bb), lambda i: (i, 0, 0))

    out = pl.pallas_call(
        critic_kernel,
        out_shape=jax.ShapeDtypeStruct((grid_b, 1, bb), jnp.float32),
        grid=(grid_b,),
        in_specs=in_specs,
        out_specs=out_spec,
        compiler_params=pltpu.CompilerParams(
            dimension_semantics=("parallel",),
            vmem_limit_bytes=32 * 1024 * 1024),
    )(state, action,
      params["ln_gamma_s"], params["ln_gamma_a"],
      params["ln_beta_s"], params["ln_beta_a"],
      params["w1s"], params["w1a"], params["b1"],
      params["w2"], params["b2"],
      params["w3"], params["b3"],
      params["w4"], params["b4"])
    # Ragged last-tile rows (if any) are row-local garbage; slice them off.
    return out.reshape(grid_b * bb, 1)[:B]


def critic_forward_ref(state, action, params):
    """Pure-JAX reference (f32 math on the same stored parameters)."""
    x = jnp.concatenate([state, action], axis=1).astype(jnp.float32)
    gamma = jnp.concatenate([params["ln_gamma_s"], params["ln_gamma_a"]], axis=1)
    beta = jnp.concatenate([params["ln_beta_s"], params["ln_beta_a"]], axis=1)
    w1 = jnp.concatenate([params["w1s"], params["w1a"]], axis=0).astype(jnp.float32)
    mean = jnp.mean(x, axis=-1, keepdims=True)
    var = jnp.mean((x - mean) ** 2, axis=-1, keepdims=True)
    h = jnp.tanh((x - mean) * jax.lax.rsqrt(var + LN_EPS) * gamma + beta)
    h = jax.nn.relu(h @ w1 + params["b1"])
    h = jax.nn.relu(h @ params["w2"].astype(jnp.float32) + params["b2"])
    h = jax.nn.relu(h @ params["w3"].astype(jnp.float32) + params["b3"])
    return h @ params["w4"].astype(jnp.float32).T + params["b4"]


if __name__ == "__main__":
    observations = 24
    actions = 8
    batch = 8

    key = jax.random.PRNGKey(0)
    k_params, k_state, k_action = jax.random.split(key, 3)

    params = init_critic_params(k_params, observations, actions)
    state = jax.random.normal(k_state, (batch, observations), jnp.float32)
    action = jax.random.normal(k_action, (batch, actions), jnp.float32)

    out = critic_forward(state, action, params)
    jax.block_until_ready(out)
    ref = critic_forward_ref(state, action, params)
    assert out.shape == (batch, 1), out.shape
    # bf16 matmul operands with f32 accumulation vs. pure-f32 reference math.
    assert jnp.allclose(out, ref, atol=1e-3, rtol=1e-2), (out, ref)

    # Also exercise the multi-step / ragged-batch path (B not a multiple of bb).
    b2 = 300
    k_s2, k_a2 = jax.random.split(jax.random.PRNGKey(1))
    state2 = jax.random.normal(k_s2, (b2, observations), jnp.float32)
    action2 = jax.random.normal(k_a2, (b2, actions), jnp.float32)
    out2 = critic_forward(state2, action2, params)
    jax.block_until_ready(out2)
    ref2 = critic_forward_ref(state2, action2, params)
    assert out2.shape == (b2, 1), out2.shape
    assert jnp.allclose(out2, ref2, atol=1e-3, rtol=1e-2), (out2, ref2)

    # TODO(synk): at tiny batch (B~8) wall time is launch/pipeline-setup bound;
    # amortize by stacking twin critics / multiple evaluations per pallas_call.
    print("KERNEL_OK")
</pallas_src>

<mosaic_0001>
module attributes {stable_mosaic.version = 11 : i64} {
  func.func @critic_kernel(%arg0: i32, %arg1: memref<8x24xf32, #tpu.memory_space<vmem>>, %arg2: memref<8x8xf32, #tpu.memory_space<vmem>>, %arg3: memref<1x24xf32, #tpu.memory_space<vmem>>, %arg4: memref<1x8xf32, #tpu.memory_space<vmem>>, %arg5: memref<1x24xf32, #tpu.memory_space<vmem>>, %arg6: memref<1x8xf32, #tpu.memory_space<vmem>>, %arg7: memref<24x512xbf16, #tpu.memory_space<vmem>>, %arg8: memref<8x512xbf16, #tpu.memory_space<vmem>>, %arg9: memref<1x512xf32, #tpu.memory_space<vmem>>, %arg10: memref<512x512xbf16, #tpu.memory_space<vmem>>, %arg11: memref<1x512xf32, #tpu.memory_space<vmem>>, %arg12: memref<512x384xbf16, #tpu.memory_space<vmem>>, %arg13: memref<1x384xf32, #tpu.memory_space<vmem>>, %arg14: memref<1x384xbf16, #tpu.memory_space<vmem>>, %arg15: memref<1x1xf32, #tpu.memory_space<vmem>>, %arg16: memref<1x1x8xf32, #tpu.memory_space<vmem>>) attributes {dimension_semantics = [#tpu.dimension_semantics<parallel>], iteration_bounds = array<i64: 1>, scalar_prefetch = 0 : i64, scratch_operands = 0 : i64, tpu.core_type = #tpu.core_type<tc>, window_params = [{transform_indices = @transform_0, window_bounds = array<i64: 8, 24>}, {transform_indices = @transform_1, window_bounds = array<i64: 8, 8>}, {pipeline_mode = #tpu.pipeline_mode<synchronous>, transform_indices = @transform_2, window_bounds = array<i64: 1, 24>}, {pipeline_mode = #tpu.pipeline_mode<synchronous>, transform_indices = @transform_3, window_bounds = array<i64: 1, 8>}, {pipeline_mode = #tpu.pipeline_mode<synchronous>, transform_indices = @transform_4, window_bounds = array<i64: 1, 24>}, {pipeline_mode = #tpu.pipeline_mode<synchronous>, transform_indices = @transform_5, window_bounds = array<i64: 1, 8>}, {pipeline_mode = #tpu.pipeline_mode<synchronous>, transform_indices = @transform_6, window_bounds = array<i64: 24, 512>}, {pipeline_mode = #tpu.pipeline_mode<synchronous>, transform_indices = @transform_7, window_bounds = array<i64: 8, 512>}, {pipeline_mode = #tpu.pipeline_mode<synchronous>, transform_indices = @transform_8, window_bounds = array<i64: 1, 512>}, {pipeline_mode = #tpu.pipeline_mode<synchronous>, transform_indices = @transform_9, window_bounds = array<i64: 512, 512>}, {pipeline_mode = #tpu.pipeline_mode<synchronous>, transform_indices = @transform_10, window_bounds = array<i64: 1, 512>}, {pipeline_mode = #tpu.pipeline_mode<synchronous>, transform_indices = @transform_11, window_bounds = array<i64: 512, 384>}, {pipeline_mode = #tpu.pipeline_mode<synchronous>, transform_indices = @transform_12, window_bounds = array<i64: 1, 384>}, {pipeline_mode = #tpu.pipeline_mode<synchronous>, transform_indices = @transform_13, window_bounds = array<i64: 1, 384>}, {pipeline_mode = #tpu.pipeline_mode<synchronous>, transform_indices = @transform_14, window_bounds = array<i64: 1, 1>}, {transform_indices = @transform_15, window_bounds = array<i64: 1, 1, 8>}]} {
    %c0 = arith.constant 0 : index
    %c0_0 = arith.constant 0 : index
    %0 = vector.load %arg1[%c0, %c0_0] : memref<8x24xf32, #tpu.memory_space<vmem>>, vector<8x24xf32>
    %c0_1 = arith.constant 0 : index
    %c0_2 = arith.constant 0 : index
    %1 = vector.load %arg2[%c0_1, %c0_2] : memref<8x8xf32, #tpu.memory_space<vmem>>, vector<8x8xf32>
    %cst = arith.constant dense<0.000000e+00> : vector<8xf32>
    %2 = vector.multi_reduction <add>, %0, %cst [1] : vector<8x24xf32> to vector<8xf32>
    %3 = vector.shape_cast %2 : vector<8xf32> to vector<8x1xf32>
    %cst_3 = arith.constant dense<0.000000e+00> : vector<8xf32>
    %4 = vector.multi_reduction <add>, %1, %cst_3 [1] : vector<8x8xf32> to vector<8xf32>
    %5 = vector.shape_cast %4 : vector<8xf32> to vector<8x1xf32>
    %6 = arith.addf %3, %5 : vector<8x1xf32>
    %cst_4 = arith.constant 3.125000e-02 : f32
    %7 = vector.broadcast %cst_4 : f32 to vector<8x1xf32>
    %8 = arith.mulf %6, %7 : vector<8x1xf32>
    %9 = vector.broadcast %8 : vector<8x1xf32> to vector<8x24xf32>
    %10 = arith.subf %0, %9 : vector<8x24xf32>
    %11 = vector.broadcast %8 : vector<8x1xf32> to vector<8x8xf32>
    %12 = arith.subf %1, %11 : vector<8x8xf32>
    %13 = arith.mulf %10, %10 : vector<8x24xf32>
    %cst_5 = arith.constant dense<0.000000e+00> : vector<8xf32>
    %14 = vector.multi_reduction <add>, %13, %cst_5 [1] : vector<8x24xf32> to vector<8xf32>
    %15 = vector.shape_cast %14 : vector<8xf32> to vector<8x1xf32>
    %16 = arith.mulf %12, %12 : vector<8x8xf32>
    %cst_6 = arith.constant dense<0.000000e+00> : vector<8xf32>
    %17 = vector.multi_reduction <add>, %16, %cst_6 [1] : vector<8x8xf32> to vector<8xf32>
    %18 = vector.shape_cast %17 : vector<8xf32> to vector<8x1xf32>
    %19 = arith.addf %15, %18 : vector<8x1xf32>
    %cst_7 = arith.constant 3.125000e-02 : f32
    %20 = vector.broadcast %cst_7 : f32 to vector<8x1xf32>
    %21 = arith.mulf %19, %20 : vector<8x1xf32>
    %cst_8 = arith.constant 9.99999974E-6 : f32
    %22 = vector.broadcast %cst_8 : f32 to vector<8x1xf32>
    %23 = arith.addf %21, %22 : vector<8x1xf32>
    %24 = math.rsqrt %23 : vector<8x1xf32>
    %25 = vector.broadcast %24 : vector<8x1xf32> to vector<8x24xf32>
    %26 = arith.mulf %10, %25 : vector<8x24xf32>
    %c0_9 = arith.constant 0 : index
    %c0_10 = arith.constant 0 : index
    %27 = vector.load %arg3[%c0_9, %c0_10] : memref<1x24xf32, #tpu.memory_space<vmem>>, vector<1x24xf32>
    %28 = vector.broadcast %27 : vector<1x24xf32> to vector<8x24xf32>
    %29 = arith.mulf %26, %28 : vector<8x24xf32>
    %c0_11 = arith.constant 0 : index
    %c0_12 = arith.constant 0 : index
    %30 = vector.load %arg5[%c0_11, %c0_12] : memref<1x24xf32, #tpu.memory_space<vmem>>, vector<1x24xf32>
    %31 = vector.broadcast %30 : vector<1x24xf32> to vector<8x24xf32>
    %32 = arith.addf %29, %31 : vector<8x24xf32>
    %33 = math.tanh %32 : vector<8x24xf32>
    %34 = vector.broadcast %24 : vector<8x1xf32> to vector<8x8xf32>
    %35 = arith.mulf %12, %34 : vector<8x8xf32>
    %c0_13 = arith.constant 0 : index
    %c0_14 = arith.constant 0 : index
    %36 = vector.load %arg4[%c0_13, %c0_14] : memref<1x8xf32, #tpu.memory_space<vmem>>, vector<1x8xf32>
    %37 = vector.broadcast %36 : vector<1x8xf32> to vector<8x8xf32>
    %38 = arith.mulf %35, %37 : vector<8x8xf32>
    %c0_15 = arith.constant 0 : index
    %c0_16 = arith.constant 0 : index
    %39 = vector.load %arg6[%c0_15, %c0_16] : memref<1x8xf32, #tpu.memory_space<vmem>>, vector<1x8xf32>
    %40 = vector.broadcast %39 : vector<1x8xf32> to vector<8x8xf32>
    %41 = arith.addf %38, %40 : vector<8x8xf32>
    %42 = math.tanh %41 : vector<8x8xf32>
    %43 = arith.truncf %33 : vector<8x24xf32> to vector<8x24xbf16>
    %c0_17 = arith.constant 0 : index
    %c0_18 = arith.constant 0 : index
    %44 = vector.load %arg7[%c0_17, %c0_18] : memref<24x512xbf16, #tpu.memory_space<vmem>>, vector<24x512xbf16>
    %cst_19 = arith.constant dense<0.000000e+00> : vector<8x512xf32>
    %45 = tpu.matmul %43, %44, %cst_19 {dimension_numbers = #tpu.dot_dimension_numbers<[1], [0], [0], [1], [0, 0, 1, 1], [], []>} : vector<8x24xbf16>, vector<24x512xbf16>, vector<8x512xf32> -> vector<8x512xf32>
    %46 = arith.truncf %42 : vector<8x8xf32> to vector<8x8xbf16>
    %c0_20 = arith.constant 0 : index
    %c0_21 = arith.constant 0 : index
    %47 = vector.load %arg8[%c0_20, %c0_21] : memref<8x512xbf16, #tpu.memory_space<vmem>>, vector<8x512xbf16>
    %cst_22 = arith.constant dense<0.000000e+00> : vector<8x512xf32>
    %48 = tpu.matmul %46, %47, %cst_22 {dimension_numbers = #tpu.dot_dimension_numbers<[1], [0], [0], [1], [0, 0, 1, 1], [], []>} : vector<8x8xbf16>, vector<8x512xbf16>, vector<8x512xf32> -> vector<8x512xf32>
    %49 = arith.addf %45, %48 : vector<8x512xf32>
    %c0_23 = arith.constant 0 : index
    %c0_24 = arith.constant 0 : index
    %50 = vector.load %arg9[%c0_23, %c0_24] : memref<1x512xf32, #tpu.memory_space<vmem>>, vector<1x512xf32>
    %51 = vector.broadcast %50 : vector<1x512xf32> to vector<8x512xf32>
    %52 = arith.addf %49, %51 : vector<8x512xf32>
    %cst_25 = arith.constant 0.000000e+00 : f32
    %53 = vector.broadcast %cst_25 : f32 to vector<8x512xf32>
    %54 = arith.maximumf %52, %53 : vector<8x512xf32>
    %55 = arith.truncf %54 : vector<8x512xf32> to vector<8x512xbf16>
    %c0_26 = arith.constant 0 : index
    %c0_27 = arith.constant 0 : index
    %56 = vector.load %arg10[%c0_26, %c0_27] : memref<512x512xbf16, #tpu.memory_space<vmem>>, vector<512x512xbf16>
    %cst_28 = arith.constant dense<0.000000e+00> : vector<8x512xf32>
    %57 = tpu.matmul %55, %56, %cst_28 {dimension_numbers = #tpu.dot_dimension_numbers<[1], [0], [0], [1], [0, 0, 1, 1], [], []>} : vector<8x512xbf16>, vector<512x512xbf16>, vector<8x512xf32> -> vector<8x512xf32>
    %c0_29 = arith.constant 0 : index
    %c0_30 = arith.constant 0 : index
    %58 = vector.load %arg11[%c0_29, %c0_30] : memref<1x512xf32, #tpu.memory_space<vmem>>, vector<1x512xf32>
    %59 = vector.broadcast %58 : vector<1x512xf32> to vector<8x512xf32>
    %60 = arith.addf %57, %59 : vector<8x512xf32>
    %cst_31 = arith.constant 0.000000e+00 : f32
    %61 = vector.broadcast %cst_31 : f32 to vector<8x512xf32>
    %62 = arith.maximumf %60, %61 : vector<8x512xf32>
    %63 = arith.truncf %62 : vector<8x512xf32> to vector<8x512xbf16>
    %c0_32 = arith.constant 0 : index
    %c0_33 = arith.constant 0 : index
    %64 = vector.load %arg12[%c0_32, %c0_33] : memref<512x384xbf16, #tpu.memory_space<vmem>>, vector<512x384xbf16>
    %cst_34 = arith.constant dense<0.000000e+00> : vector<8x384xf32>
    %65 = tpu.matmul %63, %64, %cst_34 {dimension_numbers = #tpu.dot_dimension_numbers<[1], [0], [0], [1], [0, 0, 1, 1], [], []>} : vector<8x512xbf16>, vector<512x384xbf16>, vector<8x384xf32> -> vector<8x384xf32>
    %c0_35 = arith.constant 0 : index
    %c0_36 = arith.constant 0 : index
    %66 = vector.load %arg13[%c0_35, %c0_36] : memref<1x384xf32, #tpu.memory_space<vmem>>, vector<1x384xf32>
    %67 = vector.broadcast %66 : vector<1x384xf32> to vector<8x384xf32>
    %68 = arith.addf %65, %67 : vector<8x384xf32>
    %cst_37 = arith.constant 0.000000e+00 : f32
    %69 = vector.broadcast %cst_37 : f32 to vector<8x384xf32>
    %70 = arith.maximumf %68, %69 : vector<8x384xf32>
    %c0_38 = arith.constant 0 : index
    %c0_39 = arith.constant 0 : index
    %71 = vector.load %arg14[%c0_38, %c0_39] : memref<1x384xbf16, #tpu.memory_space<vmem>>, vector<1x384xbf16>
    %72 = arith.extf %71 : vector<1x384xbf16> to vector<1x384xf32>
    %73 = vector.broadcast %72 : vector<1x384xf32> to vector<8x384xf32>
    %74 = arith.mulf %70, %73 : vector<8x384xf32>
    %cst_40 = arith.constant dense<0.000000e+00> : vector<8xf32>
    %75 = vector.multi_reduction <add>, %74, %cst_40 [1] : vector<8x384xf32> to vector<8xf32>
    %76 = vector.shape_cast %75 : vector<8xf32> to vector<8x1xf32>
    %c0_41 = arith.constant 0 : index
    %c0_42 = arith.constant 0 : index
    %77 = vector.load %arg15[%c0_41, %c0_42] : memref<1x1xf32, #tpu.memory_space<vmem>>, vector<1x1xf32>
    %78 = vector.broadcast %77 : vector<1x1xf32> to vector<8x1xf32>
    %79 = arith.addf %76, %78 : vector<8x1xf32>
    %80 = tpu.transpose %79, [1, 0] : vector<8x1xf32> -> vector<1x8xf32>
    %c0_43 = arith.constant 0 : index
    %c0_44 = arith.constant 0 : index
    %c0_45 = arith.constant 0 : index
    %81 = vector.load %arg16[%c0_43, %c0_44, %c0_45] : memref<1x1x8xf32, #tpu.memory_space<vmem>>, vector<1x1x8xf32>
    %82 = vector.shape_cast %81 : vector<1x1x8xf32> to vector<1x8xf32>
    %83 = vector.shape_cast %80 : vector<1x8xf32> to vector<1x1x8xf32>
    tpu.vector_store %arg16[%c0_43, %c0_44, %c0_45], %83 {strides = array<i32>} : memref<1x1x8xf32, #tpu.memory_space<vmem>>, vector<1x1x8xf32>,
    return
  }
  func.func @transform_0(%arg0: i32) -> (i32, i32) {
    %c0_i32 = arith.constant 0 : i32
    %c0_i32_0 = arith.constant 0 : i32
    return %arg0, %c0_i32 : i32, i32
  }
  func.func @transform_1(%arg0: i32) -> (i32, i32) {
    %c0_i32 = arith.constant 0 : i32
    %c0_i32_0 = arith.constant 0 : i32
    return %arg0, %c0_i32 : i32, i32
  }
  func.func @transform_2(%arg0: i32) -> (i32, i32) {
    %c0_i32 = arith.constant 0 : i32
    %c0_i32_0 = arith.constant 0 : i32
    %c0_i32_1 = arith.constant 0 : i32
    return %c0_i32, %c0_i32_0 : i32, i32
  }
  func.func @transform_3(%arg0: i32) -> (i32, i32) {
    %c0_i32 = arith.constant 0 : i32
    %c0_i32_0 = arith.constant 0 : i32
    %c0_i32_1 = arith.constant 0 : i32
    return %c0_i32, %c0_i32_0 : i32, i32
  }
  func.func @transform_4(%arg0: i32) -> (i32, i32) {
    %c0_i32 = arith.constant 0 : i32
    %c0_i32_0 = arith.constant 0 : i32
    %c0_i32_1 = arith.constant 0 : i32
    return %c0_i32, %c0_i32_0 : i32, i32
  }
  func.func @transform_5(%arg0: i32) -> (i32, i32) {
    %c0_i32 = arith.constant 0 : i32
    %c0_i32_0 = arith.constant 0 : i32
    %c0_i32_1 = arith.constant 0 : i32
    return %c0_i32, %c0_i32_0 : i32, i32
  }
  func.func @transform_6(%arg0: i32) -> (i32, i32) {
    %c0_i32 = arith.constant 0 : i32
    %c0_i32_0 = arith.constant 0 : i32
    %c0_i32_1 = arith.constant 0 : i32
    return %c0_i32, %c0_i32_0 : i32, i32
  }
  func.func @transform_7(%arg0: i32) -> (i32, i32) {
    %c0_i32 = arith.constant 0 : i32
    %c0_i32_0 = arith.constant 0 : i32
    %c0_i32_1 = arith.constant 0 : i32
    return %c0_i32, %c0_i32_0 : i32, i32
  }
  func.func @transform_8(%arg0: i32) -> (i32, i32) {
    %c0_i32 = arith.constant 0 : i32
    %c0_i32_0 = arith.constant 0 : i32
    %c0_i32_1 = arith.constant 0 : i32
    return %c0_i32, %c0_i32_0 : i32, i32
  }
  func.func @transform_9(%arg0: i32) -> (i32, i32) {
    %c0_i32 = arith.constant 0 : i32
    %c0_i32_0 = arith.constant 0 : i32
    %c0_i32_1 = arith.constant 0 : i32
    return %c0_i32, %c0_i32_0 : i32, i32
  }
  func.func @transform_10(%arg0: i32) -> (i32, i32) {
    %c0_i32 = arith.constant 0 : i32
    %c0_i32_0 = arith.constant 0 : i32
    %c0_i32_1 = arith.constant 0 : i32
    return %c0_i32, %c0_i32_0 : i32, i32
  }
  func.func @transform_11(%arg0: i32) -> (i32, i32) {
    %c0_i32 = arith.constant 0 : i32
    %c0_i32_0 = arith.constant 0 : i32
    %c0_i32_1 = arith.constant 0 : i32
    return %c0_i32, %c0_i32_0 : i32, i32
  }
  func.func @transform_12(%arg0: i32) -> (i32, i32) {
    %c0_i32 = arith.constant 0 : i32
    %c0_i32_0 = arith.constant 0 : i32
    %c0_i32_1 = arith.constant 0 : i32
    return %c0_i32, %c0_i32_0 : i32, i32
  }
  func.func @transform_13(%arg0: i32) -> (i32, i32) {
    %c0_i32 = arith.constant 0 : i32
    %c0_i32_0 = arith.constant 0 : i32
    %c0_i32_1 = arith.constant 0 : i32
    return %c0_i32, %c0_i32_0 : i32, i32
  }
  func.func @transform_14(%arg0: i32) -> (i32, i32) {
    %c0_i32 = arith.constant 0 : i32
    %c0_i32_0 = arith.constant 0 : i32
    %c0_i32_1 = arith.constant 0 : i32
    return %c0_i32, %c0_i32_0 : i32, i32
  }
  func.func @transform_15(%arg0: i32) -> (i32, i32, i32) {
    %c0_i32 = arith.constant 0 : i32
    %c0_i32_0 = arith.constant 0 : i32
    %c0_i32_1 = arith.constant 0 : i32
    return %arg0, %c0_i32, %c0_i32_0 : i32, i32, i32
  }
}

</mosaic_0001>

<bundles_post_ra>
// kernel: tpu_custom_call.1
= control target key start
LH: loop header
LB: loop body
LE: loop exit
PB: predicated region body
PF: predicated region fallthrough
CT: control target
= control target key end

     0   :  { %s3483_s0 = inlined_call_operand.hbm [shape: f32[8,24], index: 0, kind: input, shape index: {}]   ;;  %s3484_s1 = inlined_call_operand.hbm [shape: f32[8,8], index: 1, kind: input, shape index: {}]   ;;  %s3485_s2 = inlined_call_operand.hbm [shape: f32[1,24], index: 2, kind: input, shape index: {}]   ;;  %s3486_s3 = inlined_call_operand.hbm [shape: f32[1,8], index: 3, kind: input, shape index: {}]   ;;  %s3487_s4 = inlined_call_operand.hbm [shape: f32[1,24], index: 4, kind: input, shape index: {}]   ;;  %s3488_s5 = inlined_call_operand.hbm [shape: f32[1,8], index: 5, kind: input, shape index: {}]   ;;  %s3489_s6 = inlined_call_operand.hbm [shape: bf16[24,512], index: 6, kind: input, shape index: {}]   ;;  %s3490_s7 = inlined_call_operand.hbm [shape: bf16[8,512], index: 7, kind: input, shape index: {}]   ;;  %s3491_s8 = inlined_call_operand.vmem [shape: f32[1,512], index: 8, kind: input, shape index: {}]   ;;  %s3492_s9 = inlined_call_operand.hbm [shape: bf16[512,512], index: 9, kind: input, shape index: {}]   ;;  %s3493_s10 = inlined_call_operand.vmem [shape: f32[1,512], index: 10, kind: input, shape index: {}]   ;;  %s3494_s11 = inlined_call_operand.hbm [shape: bf16[512,384], index: 11, kind: input, shape index: {}]   ;;  %s3495_s12 = inlined_call_operand.vmem [shape: f32[1,384], index: 12, kind: input, shape index: {}]   ;;  %s3496_s13 = inlined_call_operand.vmem [shape: bf16[1,384], index: 13, kind: input, shape index: {}]   ;;  %s3497_s14 = inlined_call_operand.<no memory space> [shape: f32[1,1], index: 14, kind: input, shape index: {}]   ;;  %s3498_s15 = inlined_call_operand.hbm [shape: f32[1,1,8], index: 15, kind: output, shape index: {}]  }
   0x1   :  { %v20_v0 = vstv %s3497_s14 }
   0x2   :  { %21 = vst [vmem:[#allocation2] sm:$0x1] %v20_v0 }
   0x3   :  { %22 = vsyncpa [#allocation4], 0 }
   0x4   :  { %23 = vsyncpa [#allocation7], 0 }
   0x5   :  { %24 = vsyncpa [#allocation10], 0 }
   0x6   :  { %25 = vsyncpa [#allocation13], 0 }
   0x7   :  { %26 = vsyncpa [#allocation16], 0 }
   0x8   :  { %27 = vsyncpa [#allocation19], 0 }
   0x9   :  { %28 = vsyncpa [#allocation5], 0  ;;  %s3284_s20 = smov [#allocation6]   ;;  %s3285_s22 = smov [#allocation9]  }
   0xa   :  { %s45_s21 = sshll.u32 %s3284_s20, 4  ;;  %s65_s23 = sshll.u32 %s3285_s22, 4  ;;  %s46_s21 = int_to_ptr.vmem [resolvable:$true] %s45_s21  ;;  %s66_s23 = int_to_ptr.vmem [resolvable:$true] %s65_s23 }
   0xb   :  { %s3058_s24 = scalar_lea.vmem %s46_s21, 128  ;;  %p3063_p1 = scmp.lt.s32.totalorder %s46_s21, %s46_s21 }
   0xc   :  { %p3059_p0 = scmp.ne.s32.totalorder %s46_s21, %s3058_s24  ;;  %p3064_p2 = scmp.lt.s32.totalorder %s3058_s24, %s3058_s24 }
   0xe   :  { %p3065_p3 = por %p3064_p2, %p3063_p1 }
  0x10   :  { %p3066_p4 = pnand %p3065_p3, %p3059_p0 }
  0x12   :  { %3069 = shalt.err (!%p3066_p4)
}
  0x13   :  { %48 = dma.hbm_to_vmem [thread:$0]  %s3484_s1, 128, %s46_s21, [#allocation7]  }
  0x14   :  { %s3078_s26 = scalar_lea.vmem %s66_s23, 16  ;;  %s3082_s27 = scalar_lea.vmem %s66_s23, 32 }
  0x15   :  { %p3079_p5 = scmp.ne.s32.totalorder %s66_s23, %s3078_s26  ;;  %p3083_p6 = scmp.lt.s32.totalorder %s66_s23, %s66_s23 }
  0x16   :  { %p3084_p7 = scmp.lt.s32.totalorder %s3082_s27, %s3078_s26 }
  0x18   :  { %p3085_p8 = por %p3084_p7, %p3083_p6 }
  0x1a   :  { %p3086_p9 = pnand %p3085_p8, %p3079_p5 }
  0x1c   :  { %3089 = shalt.err (!%p3086_p9)
}
  0x1d   :  { %68 = dma.hbm_to_vmem [thread:$0]  %s3486_s3, 16, %s66_s23, [#allocation10]  }
  0x1e   :  { %s3286_s30 = smov [#allocation12]   ;;  %s3287_s17 = smov [#allocation15]  }
  0x1f   :  { %s85_s16 = sshll.u32 %s3286_s30, 4  ;;  %s107_s18 = sshll.u32 %s3287_s17, 4  ;;  %s86_s16 = int_to_ptr.vmem [resolvable:$true] %s85_s16  ;;  %s108_s18 = int_to_ptr.vmem [resolvable:$true] %s107_s18 }
  0x20   :  { %s3098_s19 = scalar_lea.vmem %s86_s16, 16  ;;  %s3102_s1 = scalar_lea.vmem %s86_s16, 32 }
  0x21   :  { %p3099_p10 = scmp.ne.s32.totalorder %s86_s16, %s3098_s19  ;;  %p3103_p11 = scmp.lt.s32.totalorder %s86_s16, %s86_s16 }
  0x22   :  { %p3104_p12 = scmp.lt.s32.totalorder %s3102_s1, %s3098_s19 }
  0x24   :  { %p3105_p13 = por %p3104_p12, %p3103_p11 }
  0x26   :  { %p3106_p0 = pnand %p3105_p13, %p3099_p10 }
  0x28   :  { %3109 = shalt.err (!%p3106_p0)
}
  0x29   :  { %88 = dma.hbm_to_vmem [thread:$0]  %s3488_s5, 16, %s86_s16, [#allocation13]  }
  0x2a   :  { %s3118_s22 = scalar_lea.vmem %s108_s18, 256  ;;  %p3123_p2 = scmp.lt.s32.totalorder %s108_s18, %s108_s18 }
  0x2b   :  { %p3119_p1 = scmp.ne.s32.totalorder %s108_s18, %s3118_s22  ;;  %p3124_p3 = scmp.lt.s32.totalorder %s3118_s22, %s3118_s22 }
  0x2d   :  { %p3125_p4 = por %p3124_p3, %p3123_p2 }
  0x2f   :  { %p3126_p5 = pnand %p3125_p4, %p3119_p1 }
  0x31   :  { %3129 = shalt.err (!%p3126_p5)
}
  0x32   :  { %110 = dma.hbm_to_vmem [thread:$0]  %s3490_s7, 256, %s108_s18, [#allocation16]  }
  0x33   :  { %s3288_s24 = smov [#allocation3]   ;;  %s3289_s25 = smov [#allocation8]  }
  0x34   :  { %s35_s14 = sshll.u32 %s3288_s24, 4  ;;  %s55_s26 = sshll.u32 %s3289_s25, 4  ;;  %s36_s14 = int_to_ptr.vmem [resolvable:$true] %s35_s14  ;;  %s56_s26 = int_to_ptr.vmem [resolvable:$true] %s55_s26 }
  0x35   :  { %s3138_s27 = scalar_lea.vmem %s36_s14, 128  ;;  %p3143_p7 = scmp.lt.s32.totalorder %s36_s14, %s36_s14 }
  0x36   :  { %p3139_p6 = scmp.ne.s32.totalorder %s36_s14, %s3138_s27  ;;  %p3144_p8 = scmp.lt.s32.totalorder %s3138_s27, %s3138_s27 }
  0x38   :  { %p3145_p9 = por %p3144_p8, %p3143_p7 }
  0x3a   :  { %p3146_p10 = pnand %p3145_p9, %p3139_p6 }
  0x3c   :  { %3149 = shalt.err (!%p3146_p10)
}
  0x3d   :  { %38 = dma.hbm_to_vmem [thread:$0]  %s3483_s0, 128, %s36_s14, [#allocation4]  }
  0x3e   :  { %s3158_s29 = scalar_lea.vmem %s56_s26, 16  ;;  %s3162_s7 = scalar_lea.vmem %s56_s26, 32 }
  0x3f   :  { %p3159_p11 = scmp.ne.s32.totalorder %s56_s26, %s3158_s29  ;;  %p3163_p12 = scmp.lt.s32.totalorder %s56_s26, %s56_s26 }
  0x40   :  { %p3164_p13 = scmp.lt.s32.totalorder %s3162_s7, %s3158_s29 }
  0x42   :  { %p3165_p0 = por %p3164_p13, %p3163_p12 }
  0x44   :  { %p3166_p1 = pnand %p3165_p0, %p3159_p11 }
  0x46   :  { %3169 = shalt.err (!%p3166_p1)
}
  0x47   :  { %58 = dma.hbm_to_vmem [thread:$0]  %s3485_s2, 16, %s56_s26, [#allocation7]  }
  0x48   :  { %s3290_s17 = smov [#allocation11]   ;;  %s3291_s19 = smov [#allocation14]  }
  0x49   :  { %s75_s18 = sshll.u32 %s3290_s17, 4  ;;  %s94_s1 = sshll.u32 %s3291_s19, 4  ;;  %s76_s18 = int_to_ptr.vmem [resolvable:$true] %s75_s18  ;;  %s95_s1 = int_to_ptr.vmem [resolvable:$true] %s94_s1 }
  0x4a   :  { %s3178_s20 = scalar_lea.vmem %s76_s18, 16  ;;  %s3182_s0 = scalar_lea.vmem %s76_s18, 32 }
  0x4b   :  { %p3179_p2 = scmp.ne.s32.totalorder %s76_s18, %s3178_s20  ;;  %p3183_p3 = scmp.lt.s32.totalorder %s76_s18, %s76_s18 }
  0x4c   :  { %p3184_p4 = scmp.lt.s32.totalorder %s3182_s0, %s3178_s20 }
  0x4e   :  { %p3185_p5 = por %p3184_p4, %p3183_p3 }
  0x50   :  { %p3186_p6 = pnand %p3185_p5, %p3179_p2 }
  0x52   :  { %3189 = shalt.err (!%p3186_p6)
}
  0x53   :  { %78 = dma.hbm_to_vmem [thread:$0]  %s3487_s4, 16, %s76_s18, [#allocation10]  }
  0x54   :  { %s3198_s3 = scalar_lea.vmem %s95_s1, 768  ;;  %p3203_p8 = scmp.lt.s32.totalorder %s95_s1, %s95_s1 }
  0x55   :  { %p3199_p7 = scmp.ne.s32.totalorder %s95_s1, %s3198_s3  ;;  %p3204_p9 = scmp.lt.s32.totalorder %s3198_s3, %s3198_s3 }
  0x57   :  { %p3205_p10 = por %p3204_p9, %p3203_p8 }
  0x59   :  { %p3206_p11 = pnand %p3205_p10, %p3199_p7 }
  0x5b   :  { %3209 = shalt.err (!%p3206_p11)
}
  0x5c   :  { %s3292_s2 = smov 256   ;;  %s3293_s23 = smov 16  }
  0x5d   :  { %100 = dma.hbm_to_vmem [thread:$0]  %s3489_s6, 768, %s95_s1, [#allocation13], %s3292_s2, %s3292_s2, %s3293_s23  }
  0x5e   :  { %s3294_s25 = smov [#allocation17]   ;;  %s3295_s27 = smov [#allocation18]  }
  0x5f   :  { %s118_s26 = sshll.u32 %s3294_s25, 4  ;;  %s132_s5 = sshll.u32 %s3295_s27, 4  ;;  %s119_s26 = int_to_ptr.vmem [resolvable:$true] %s118_s26  ;;  %s133_s5 = int_to_ptr.vmem [resolvable:$true] %s132_s5 }
  0x60   :  { %s3218_s4 = scalar_lea.vmem %s119_s26, 16384  ;;  %p3223_p13 = scmp.lt.s32.totalorder %s119_s26, %s119_s26 }
  0x61   :  { %p3219_p12 = scmp.ne.s32.totalorder %s119_s26, %s3218_s4  ;;  %p3224_p0 = scmp.lt.s32.totalorder %s3218_s4, %s3218_s4 }
  0x63   :  { %p3225_p1 = por %p3224_p0, %p3223_p13 }
  0x65   :  { %p3226_p2 = pnand %p3225_p1, %p3219_p12 }
  0x67   :  { %3229 = shalt.err (!%p3226_p2)
}
  0x68   :  { %124 = dma.hbm_to_vmem [thread:$0]  %s3492_s9, 16384, %s119_s26, [#allocation16], %s3292_s2, %s3292_s2, %s3293_s23  }
  0x69   :  { %s3238_s7 = scalar_lea.vmem %s133_s5, 12288  ;;  %p3243_p4 = scmp.lt.s32.totalorder %s133_s5, %s133_s5 }
  0x6a   :  { %p3239_p3 = scmp.ne.s32.totalorder %s133_s5, %s3238_s7  ;;  %p3244_p5 = scmp.lt.s32.totalorder %s3238_s7, %s3238_s7 }
  0x6c   :  { %p3245_p6 = por %p3244_p5, %p3243_p4 }
  0x6e   :  { %p3246_p7 = pnand %p3245_p6, %p3239_p3 }
  0x70   :  { %3249 = shalt.err (!%p3246_p7)
}
  0x71   :  { %s3296_s6 = smov 192   ;;  %s3297_s30 = smov 12  }
  0x72   :  { %138 = dma.hbm_to_vmem [thread:$0]  %s3494_s11, 12288, %s133_s5, [#allocation19], %s3296_s6, %s3296_s6, %s3297_s30  }
  0x73   :  { %3270 = dma.done.wait [#allocation4], 128  }
  0x74   :  { %3271 = vsyncadd [#allocation4], 4294967168 }
  0x75   :  { %3272 = dma.done.wait [#allocation7], 144  }
  0x76   :  { %3273 = vsyncadd [#allocation7], 4294967152 }
  0x77   :  { %3274 = dma.done.wait [#allocation10], 32  }
  0x78   :  { %3275 = vsyncadd [#allocation10], 4294967264 }
  0x79   :  { %3276 = dma.done.wait [#allocation13], 784  }
  0x7a   :  { %3277 = vsyncadd [#allocation13], 4294966512 }
  0x7b   :  { %3278 = dma.done.wait [#allocation16], 16640  }
  0x7c   :  { %3279 = vsyncadd [#allocation16], 4294950656 }
  0x7d   :  { %3280 = dma.done.wait [#allocation19], 12288  }
  0x7e   :  { %3281 = vsyncadd [#allocation19], 4294955008  ;;  %vm178_vm0 = vcmask 195584   ;;  %v176_v1 = vld [vmem:[#allocation3] sm:$0xff]  ;;  %v177_v2 = vld [vmem:[#allocation6] sm:$0xff]  ;;  %vm182_vm1 = vcmask 64512  }
  0x7f   :  { %v179_v3 = vsel %vm178_vm0, %v176_v1, 0.0  ;;  %v183_v4 = vsel %vm182_vm1, %v177_v2, 0.0  ;;  %v246_v15 = vld [vmem:[#allocation15] sm:$0xff]  ;;  %vm261_vm2 = vcmask 1043456   ;;  %v247_v16 = vld [vmem:[#allocation15 + $0x8] sm:$0xff]  ;;  %v243_v17 = vld [vmem:[#allocation14 + $0x20] sm:$0xff] }
  0x80   :  { %180 = vadd.xlane.f32.xlu0 %v179_v3  ;;  %v2405_v18 = vcombine.high %v246_v15, %v246_v15  ;;  %v2404_v19 = vcombine.low %v246_v15, %v246_v15  ;;  %v2407_v20 = vcombine.high %v247_v16, %v247_v16  ;;  %v2406_v21 = vcombine.low %v247_v16, %v247_v16  ;;  %v244_v26 = vld [vmem:[#allocation14 + $0x28] sm:$0xff]  ;;  %v2402_v38 = vld [vmem:[#allocation9] ss:$0 sm:$0xff]  ;;  %v2403_v41 = vld [vmem:[#allocation12] ss:$0 sm:$0xff] }
  0x81   :  { %v3298_v22 = vmov 0   ;;  %v2417_v23 = vcombine.high %v243_v17, %v243_v17  ;;  %v2416_v27 = vcombine.low %v243_v17, %v243_v17  ;;  %v2419_v28 = vcombine.high %v244_v26, %v244_v26  ;;  %v2400_v42 = vld [vmem:[#allocation8] ss:$0 sm:$0xff]  ;;  %v2401_v46 = vld [vmem:[#allocation11] ss:$0 sm:$0xff] }
  0x82   :  { %306 = vmatprep.mubr.bf16.mxu0 %v3298_v22  ;;  %347 = vmatprep.mubr.bf16.mxu1 %v3298_v22  ;;  %v263_v24 = vsel %vm261_vm2, %v2404_v19, 0  ;;  %v269_v25 = vsel %vm261_vm2, %v2406_v21, 0  ;;  %v2418_v29 = vcombine.low %v244_v26, %v244_v26  ;;  %v2720_v50 = vld [vmem:[#allocation14 + $0x4] ss:$16 sps:$4 sm:$0xff]   ;;  %v2723_v51 = vld [vmem:[#allocation14 + $0xc] ss:$16 sps:$4 sm:$0xff]  }
  0x83   :  { %2408 = vmatprep.subr.msk.bf16.mxu0 %vm261_vm2, %v2405_v18  ;;  %2410 = vmatprep.subr.msk.bf16.mxu1 %vm261_vm2, %v2407_v20  ;;  %v390_v30 = vsel %vm261_vm2, %v2416_v27, 0  ;;  %v2718_v52 = vld [vmem:[#allocation14] ss:$16 sps:$4 sm:$0xff]   ;;  %v2721_v53 = vld [vmem:[#allocation14 + $0x8] ss:$16 sps:$4 sm:$0xff]   ;;  %vm2378_vm3 = vcmask 57344  }
  0x84   :  { %184 = vadd.xlane.f32.xlu0 %v183_v4  ;;  %289 = vmatpush1.bf16.msra.mxu0 %v263_v24  ;;  %v396_v31 = vsel %vm261_vm2, %v2418_v29, 0  ;;  %v2726_v54 = vld [vmem:[#allocation17 + $0xe4] ss:$16 sps:$4 sm:$0xff]   ;;  %v2724_v57 = vld [vmem:[#allocation17 + $0xe0] ss:$16 sps:$4 sm:$0xff]  }
  0x85   :  { %330 = vmatpush1.bf16.msra.mxu1 %v269_v25  ;;  %2420 = vmatprep.subr.msk.bf16.mxu0 %vm261_vm2, %v2417_v23  ;;  %v2729_v55 = vld [vmem:[#allocation17 + $0x2e4] ss:$16 sps:$4 sm:$0xff]   ;;  %v2727_v58 = vld [vmem:[#allocation17 + $0x2e0] ss:$16 sps:$4 sm:$0xff]  }
  0x86   :  { %2422 = vmatprep.subr.msk.bf16.mxu1 %vm261_vm2, %v2419_v28  ;;  %v2732_v60 = vld [vmem:[#allocation17 + $0xc4] ss:$16 sps:$4 sm:$0xff]   ;;  %v2730_v62 = vld [vmem:[#allocation17 + $0xc0] ss:$16 sps:$4 sm:$0xff]  }
  0x87   :  { %v2735_v61 = vld [vmem:[#allocation17 + $0x2c4] ss:$16 sps:$4 sm:$0xff]   ;;  %v2733_v63 = vld [vmem:[#allocation17 + $0x2c0] ss:$16 sps:$4 sm:$0xff]  }
  0x88   :  { %v2738_v0 = vld [vmem:[#allocation17 + $0xa4] ss:$16 sps:$4 sm:$0xff]   ;;  %v2739_v3 = vld [vmem:[#allocation17 + $0x2a0] ss:$16 sps:$4 sm:$0xff]  }
  0x89   :  { %v2744_v4 = vld [vmem:[#allocation17 + $0x84] ss:$16 sps:$4 sm:$0xff]   ;;  %v2757_v15 = vld [vmem:[#allocation17 + $0x240] ss:$16 sps:$4 sm:$0xff]  }
  0x8a   :  { %v2762_v16 = vld [vmem:[#allocation17 + $0x24] ss:$16 sps:$4 sm:$0xff]   ;;  %v2760_v18 = vld [vmem:[#allocation17 + $0x20] ss:$16 sps:$4 sm:$0xff]  }
  0x8b   :  { %v2765_v17 = vld [vmem:[#allocation17 + $0x224] ss:$16 sps:$4 sm:$0xff]   ;;  %v2763_v19 = vld [vmem:[#allocation17 + $0x220] ss:$16 sps:$4 sm:$0xff]  }
  0x8c   :  { %v2768_v20 = vld [vmem:[#allocation17 + $0x4] ss:$16 sps:$4 sm:$0xff]   ;;  %v2769_v23 = vld [vmem:[#allocation17 + $0x200] ss:$16 sps:$4 sm:$0xff]  }
  0x8d   :  { %v2771_v21 = vld [vmem:[#allocation17 + $0x204] ss:$16 sps:$4 sm:$0xff]   ;;  %v2772_v26 = vld [vmem:[#allocation17 + $0x1e0] ss:$16 sps:$4 sm:$0xff]  }
  0x8e   :  { %v2774_v24 = vld [vmem:[#allocation17 + $0x1e4] ss:$16 sps:$4 sm:$0xff]   ;;  %v2775_v27 = vld [vmem:[#allocation17 + $0x3e0] ss:$16 sps:$4 sm:$0xff]  }
  0x8f   :  { %v2777_v25 = vld [vmem:[#allocation17 + $0x3e4] ss:$16 sps:$4 sm:$0xff]  }
  0x90   :  { %v2780_v28 = vld [vmem:[#allocation17 + $0x1c4] ss:$16 sps:$4 sm:$0xff]  }
  0x91   :  { %v2783_v29 = vld [vmem:[#allocation17 + $0x3c4] ss:$16 sps:$4 sm:$0xff]  }
 0x109   :  { %v181_v5 = vpop.xlane.xlu0 %180 }
 0x10d   :  { %v185_v6 = vpop.xlane.xlu0 %184 }
 0x10e   :  { %v186_v7 = vadd.f32 %v185_v6, %v181_v5  ;;  %v2747_v5 = vld [vmem:[#allocation17 + $0x284] ss:$16 sps:$4 sm:$0xff]   ;;  %v2742_v6 = vld [vmem:[#allocation17 + $0x80] ss:$16 sps:$4 sm:$0xff]  }
 0x110   :  { %v187_v8 = vmul.f32 0.03125, %v186_v7  ;;  %v2745_v7 = vld [vmem:[#allocation17 + $0x280] ss:$16 sps:$4 sm:$0xff]  }
 0x112   :  { %v188_v9 = vsub.f32 %v176_v1, %v187_v8  ;;  %v189_v10 = vsub.f32 %v177_v2, %v187_v8  ;;  %v2741_v1 = vld [vmem:[#allocation17 + $0x2a4] ss:$16 sps:$4 sm:$0xff]   ;;  %v2736_v2 = vld [vmem:[#allocation17 + $0xa0] ss:$16 sps:$4 sm:$0xff]  }
 0x113   :  { %v2750_v8 = vld [vmem:[#allocation17 + $0x64] ss:$16 sps:$4 sm:$0xff]  }
 0x114   :  { %v190_v11 = vmul.f32 %v188_v9, %v188_v9  ;;  %v194_v13 = vmul.f32 %v189_v10, %v189_v10 }
 0x116   :  { %v191_v12 = vsel %vm178_vm0, %v190_v11, 0.0  ;;  %v195_v14 = vsel %vm182_vm1, %v194_v13, 0.0  ;;  %v2751_v11 = vld [vmem:[#allocation17 + $0x260] ss:$16 sps:$4 sm:$0xff]   ;;  %v2759_v13 = vld [vmem:[#allocation17 + $0x244] ss:$16 sps:$4 sm:$0xff]  }
 0x117   :  { %192 = vadd.xlane.f32.xlu1 %v191_v12  ;;  %v2756_v12 = vld [vmem:[#allocation17 + $0x44] ss:$16 sps:$4 sm:$0xff]  }
 0x11b   :  { %196 = vadd.xlane.f32.xlu1 %v195_v14  ;;  %v2754_v14 = vld [vmem:[#allocation17 + $0x40] ss:$16 sps:$4 sm:$0xff]  }
 0x1a0   :  { %v193_v32 = vpop.xlane.xlu1 %192 }
 0x1a4   :  { %v197_v33 = vpop.xlane.xlu1 %196 }
 0x1a5   :  { %v198_v34 = vadd.f32 %v197_v33, %v193_v32  ;;  %v2786_v32 = vld [vmem:[#allocation17 + $0x1a4] ss:$16 sps:$4 sm:$0xff]  }
 0x1a6   :  { %v2789_v33 = vld [vmem:[#allocation17 + $0x3a4] ss:$16 sps:$4 sm:$0xff]  }
 0x1a7   :  { %v199_v35 = vmul.f32 0.03125, %v198_v34  ;;  %v2784_v34 = vld [vmem:[#allocation17 + $0x1a0] ss:$16 sps:$4 sm:$0xff]  }
 0x1a9   :  { %v200_v36 = vadd.f32 1e-05, %v199_v35  ;;  %v2787_v35 = vld [vmem:[#allocation17 + $0x3a0] ss:$16 sps:$4 sm:$0xff]  }
 0x1ab   :  { %3044 = vrsqrt.f32 %v200_v36  ;;  %v2792_v36 = vld [vmem:[#allocation17 + $0x184] ss:$16 sps:$4 sm:$0xff]  }
 0x1b8   :  { %v3045_v37 = vpop.eup %3044 }
 0x1b9   :  { %v202_v39 = vmul.f32 %v3045_v37, %v188_v9  ;;  %v220_v40 = vmul.f32 %v3045_v37, %v189_v10  ;;  %v2753_v9 = vld [vmem:[#allocation17 + $0x264] ss:$16 sps:$4 sm:$0xff]   ;;  %v2748_v10 = vld [vmem:[#allocation17 + $0x60] ss:$16 sps:$4 sm:$0xff]  }
 0x1ba   :  { %v2795_v37 = vld [vmem:[#allocation17 + $0x384] ss:$16 sps:$4 sm:$0xff]  }
 0x1bb   :  { %v228_v43 = vmul.f32 %v2402_v38, %v220_v40  ;;  %v210_v45 = vmul.f32 %v2400_v42, %v202_v39  ;;  %v2790_v38 = vld [vmem:[#allocation17 + $0x180] ss:$16 sps:$4 sm:$0xff]  }
 0x1bc   :  { %v2793_v39 = vld [vmem:[#allocation17 + $0x380] ss:$16 sps:$4 sm:$0xff]  }
 0x1bd   :  { %v236_v44 = vadd.f32 %v2403_v41, %v228_v43  ;;  %v218_v47 = vadd.f32 %v2401_v46, %v210_v45  ;;  %v2796_v40 = vld [vmem:[#allocation17 + $0x160] ss:$16 sps:$4 sm:$0xff]   ;;  %v2798_v41 = vld [vmem:[#allocation17 + $0x164] ss:$16 sps:$4 sm:$0xff]  }
 0x1be   :  { %v2799_v42 = vld [vmem:[#allocation17 + $0x360] ss:$16 sps:$4 sm:$0xff]   ;;  %v2801_v43 = vld [vmem:[#allocation17 + $0x364] ss:$16 sps:$4 sm:$0xff]  }
 0x1bf   :  { %3046 = vtanh.f32 %v236_v44  ;;  %v2802_v44 = vld [vmem:[#allocation17 + $0x140] ss:$16 sps:$4 sm:$0xff]   ;;  %v2804_v45 = vld [vmem:[#allocation17 + $0x144] ss:$16 sps:$4 sm:$0xff]  }
 0x1c0   :  { %3048 = vtanh.f32 %v218_v47  ;;  %v2805_v46 = vld [vmem:[#allocation17 + $0x340] ss:$16 sps:$4 sm:$0xff]   ;;  %v2807_v47 = vld [vmem:[#allocation17 + $0x344] ss:$16 sps:$4 sm:$0xff]  }
 0x1cc   :  { %v3047_v48 = vpop.eup %3046 }
 0x1cd   :  { %v245_v49 = vpack.c.bf16 %v3047_v48, %v3047_v48  ;;  %v3049_v56 = vpop.eup %3048  ;;  %v2810_v48 = vld [vmem:[#allocation17 + $0x124] ss:$16 sps:$4 sm:$0xff]  }
 0x1ce   :  { %v238_v59 = vpack.c.bf16 %v3049_v56, %v3049_v56  ;;  %v2822_v56 = vld [vmem:[#allocation17 + $0xec] ss:$16 sps:$4 sm:$0xff]  }
 0x1cf   :  { %2409 = vmatmul.mubr.msk.bf16.vlgmr.msra.gmra.mxu0 %vm182_vm1, %v245_v49  ;;  %2411 = vmatmul.mubr.msk.bf16.vlgmr.msra.gmra.mxu1 %vm182_vm1, %v245_v49  ;;  %v2813_v49 = vld [vmem:[#allocation17 + $0x324] ss:$16 sps:$4 sm:$0xff]  }
 0x1d0   :  { %414 = vmatpush1.bf16.msra.mxu0 %v390_v30  ;;  %455 = vmatpush1.bf16.msra.mxu1 %v396_v31  ;;  %v2778_v30 = vld [vmem:[#allocation17 + $0x1c0] ss:$16 sps:$4 sm:$0xff]  }
 0x1d1   :  { %415 = vmatprep.subr.bf16.mxu0 %v2720_v50  ;;  %456 = vmatprep.subr.bf16.mxu1 %v2723_v51  ;;  %v2781_v31 = vld [vmem:[#allocation17 + $0x3c0] ss:$16 sps:$4 sm:$0xff]  }
 0x1d2   :  { %433 = vmatprep.mubr.bf16.mxu0 %v3298_v22  ;;  %474 = vmatprep.mubr.bf16.mxu1 %v3298_v22  ;;  %v2766_v22 = vld [vmem:[#allocation17] ss:$16 sps:$4 sm:$0xff]  }
 0x1d3   :  { %v2808_v50 = vld [vmem:[#allocation17 + $0x120] ss:$16 sps:$4 sm:$0xff]  }
 0x1d4   :  { %416 = vmatpush1.bf16.msra.mxu0 %v2718_v52  ;;  %457 = vmatpush1.bf16.msra.mxu1 %v2721_v53  ;;  %v2811_v51 = vld [vmem:[#allocation17 + $0x320] ss:$16 sps:$4 sm:$0xff]   ;;  %v2816_v52 = vld [vmem:[#allocation17 + $0x104] ss:$16 sps:$4 sm:$0xff]  }
 0x1d5   :  { %1307 = vmatprep.subr.bf16.mxu0 %v2726_v54  ;;  %1348 = vmatprep.subr.bf16.mxu1 %v2729_v55  ;;  %v2819_v53 = vld [vmem:[#allocation17 + $0x304] ss:$16 sps:$4 sm:$0xff]   ;;  %v2814_v54 = vld [vmem:[#allocation17 + $0x100] ss:$16 sps:$4 sm:$0xff]  }
 0x1d6   :  { %v2817_v55 = vld [vmem:[#allocation17 + $0x300] ss:$16 sps:$4 sm:$0xff]  }
 0x1d7   :  { %2421 = vmatmul.mubr.msk.bf16.vlgmr.msra.gmra.mxu0 %vm178_vm0, %v238_v59  ;;  %2423 = vmatmul.mubr.msk.bf16.vlgmr.msra.gmra.mxu1 %vm178_vm0, %v238_v59 }
 0x1d8   :  { %1308 = vmatpush1.bf16.msra.mxu0 %v2724_v57  ;;  %1349 = vmatpush1.bf16.msra.mxu1 %v2727_v58  ;;  %v2825_v57 = vld [vmem:[#allocation17 + $0x2ec] ss:$16 sps:$4 sm:$0xff]   ;;  %v485_v58 = vlaneseq }
 0x1d9   :  { %1309 = vmatprep.subr.bf16.mxu0 %v2732_v60  ;;  %1350 = vmatprep.subr.bf16.mxu1 %v2735_v61 }
 0x1da   :  { %v3429_v59 = vshrl.u32 %v485_v58, 7  ;;  %v2853_v58 = vld [vmem:[#allocation17 + $0x248] ss:$16 sps:$4 sm:$0xff]  }
 0x1dc   :  { %1310 = vmatpush1.bf16.msra.mxu0 %v2730_v62  ;;  %1351 = vmatpush1.bf16.msra.mxu1 %v2733_v63 }
 0x1dd   :  { %1311 = vmatprep.subr.bf16.mxu0 %v2738_v0  ;;  %1352 = vmatprep.subr.bf16.mxu1 %v2741_v1  ;;  %v3432_v0 = vsub.s32 0, %v3429_v59  ;;  %v3435_v1 = vsub.s32 2, %v3429_v59 }
 0x1e0   :  { %1312 = vmatpush1.bf16.msra.mxu0 %v2736_v2  ;;  %1353 = vmatpush1.bf16.msra.mxu1 %v2739_v3 }
 0x1e1   :  { %1313 = vmatprep.subr.bf16.mxu0 %v2744_v4  ;;  %1354 = vmatprep.subr.bf16.mxu1 %v2747_v5  ;;  %v483_v4 = vld [vmem:[%s3491_s8] sm:$0xf]  ;;  %v3441_v5 = vsub.s32 1, %v3429_v59 }
 0x1e4   :  { %1314 = vmatpush1.bf16.msra.mxu0 %v2742_v6  ;;  %1355 = vmatpush1.bf16.msra.mxu1 %v2745_v7  ;;  %v499_v6 = vsub.s32 3, %v3429_v59 }
 0x1e5   :  { %1315 = vmatprep.subr.bf16.mxu0 %v2750_v8  ;;  %1356 = vmatprep.subr.bf16.mxu1 %v2753_v9  ;;  %v488_v9 = vrot.slane %v483_v4, %v3432_v0 }
 0x1e8   :  { %1316 = vmatpush1.bf16.msra.mxu0 %v2748_v10  ;;  %1357 = vmatpush1.bf16.msra.mxu1 %v2751_v11  ;;  %v496_v10 = vrot.slane %v483_v4, %v3435_v1 }
 0x1e9   :  { %1317 = vmatprep.subr.bf16.mxu0 %v2756_v12  ;;  %1358 = vmatprep.subr.bf16.mxu1 %v2759_v13 }
 0x1ec   :  { %1318 = vmatpush1.bf16.msra.mxu0 %v2754_v14  ;;  %1359 = vmatpush1.bf16.msra.mxu1 %v2757_v15  ;;  %v492_v15 = vrot.slane %v483_v4, %v3441_v5 }
 0x1ed   :  { %1319 = vmatprep.subr.bf16.mxu0 %v2762_v16  ;;  %1360 = vmatprep.subr.bf16.mxu1 %v2765_v17  ;;  %v500_v16 = vrot.slane %v483_v4, %v499_v6  ;;  %v2862_v4 = vld [vmem:[#allocation17 + $0x8] ss:$16 sps:$4 sm:$0xff]  }
 0x1f0   :  { %1320 = vmatpush1.bf16.msra.mxu0 %v2760_v18  ;;  %1361 = vmatpush1.bf16.msra.mxu1 %v2763_v19 }
 0x1f1   :  { %1321 = vmatprep.subr.bf16.mxu0 %v2768_v20  ;;  %1362 = vmatprep.subr.bf16.mxu1 %v2771_v21 }
 0x1f4   :  { %1322 = vmatpush1.bf16.msra.mxu0 %v2766_v22  ;;  %1363 = vmatpush1.bf16.msra.mxu1 %v2769_v23 }
 0x1f5   :  { %1323 = vmatprep.subr.bf16.mxu0 %v2774_v24  ;;  %1364 = vmatprep.subr.bf16.mxu1 %v2777_v25 }
 0x1f8   :  { %1324 = vmatpush2.bf16.msra.mxu0 %v2772_v26  ;;  %1365 = vmatpush2.bf16.msra.mxu1 %v2775_v27 }
 0x1f9   :  { %1325 = vmatprep.subr.bf16.mxu0 %v2780_v28  ;;  %1366 = vmatprep.subr.bf16.mxu1 %v2783_v29 }
 0x1fc   :  { %1326 = vmatpush2.bf16.msra.mxu0 %v2778_v30  ;;  %1367 = vmatpush2.bf16.msra.mxu1 %v2781_v31 }
 0x1fd   :  { %1327 = vmatprep.subr.bf16.mxu0 %v2786_v32  ;;  %1368 = vmatprep.subr.bf16.mxu1 %v2789_v33 }
 0x200   :  { %1328 = vmatpush2.bf16.msra.mxu0 %v2784_v34  ;;  %1369 = vmatpush2.bf16.msra.mxu1 %v2787_v35  ;;  %v2820_v35 = vld [vmem:[#allocation17 + $0xe8] ss:$16 sps:$4 sm:$0xff]  }
 0x201   :  { %1329 = vmatprep.subr.bf16.mxu0 %v2792_v36  ;;  %1370 = vmatprep.subr.bf16.mxu1 %v2795_v37  ;;  %v2823_v36 = vld [vmem:[#allocation17 + $0x2e8] ss:$16 sps:$4 sm:$0xff]  }
 0x204   :  { %1330 = vmatpush2.bf16.msra.mxu0 %v2790_v38  ;;  %1371 = vmatpush2.bf16.msra.mxu1 %v2793_v39  ;;  %v2828_v39 = vld [vmem:[#allocation17 + $0xcc] ss:$16 sps:$4 sm:$0xff]  }
 0x205   :  { %1331 = vmatprep.subr.bf16.mxu0 %v2798_v41  ;;  %1372 = vmatprep.subr.bf16.mxu1 %v2801_v43  ;;  %v2826_v41 = vld [vmem:[#allocation17 + $0xc8] ss:$16 sps:$4 sm:$0xff]   ;;  %v2834_v43 = vld [vmem:[#allocation17 + $0xac] ss:$16 sps:$4 sm:$0xff]  }
 0x208   :  { %1332 = vmatpush2.bf16.msra.mxu0 %v2796_v40  ;;  %1373 = vmatpush2.bf16.msra.mxu1 %v2799_v42  ;;  %v2831_v40 = vld [vmem:[#allocation17 + $0x2cc] ss:$16 sps:$4 sm:$0xff]   ;;  %v2829_v42 = vld [vmem:[#allocation17 + $0x2c8] ss:$16 sps:$4 sm:$0xff]  }
 0x209   :  { %1333 = vmatprep.subr.bf16.mxu0 %v2804_v45  ;;  %1374 = vmatprep.subr.bf16.mxu1 %v2807_v47  ;;  %v2832_v45 = vld [vmem:[#allocation17 + $0xa8] ss:$16 sps:$4 sm:$0xff]   ;;  %v2840_v47 = vld [vmem:[#allocation17 + $0x8c] ss:$16 sps:$4 sm:$0xff]  }
 0x20c   :  { %1334 = vmatpush2.bf16.msra.mxu0 %v2802_v44  ;;  %1375 = vmatpush2.bf16.msra.mxu1 %v2805_v46  ;;  %v2837_v44 = vld [vmem:[#allocation17 + $0x2ac] ss:$16 sps:$4 sm:$0xff]   ;;  %v2835_v46 = vld [vmem:[#allocation17 + $0x2a8] ss:$16 sps:$4 sm:$0xff]  }
 0x20d   :  { %1335 = vmatprep.subr.bf16.mxu0 %v2810_v48  ;;  %1376 = vmatprep.subr.bf16.mxu1 %v2813_v49  ;;  %v2843_v48 = vld [vmem:[#allocation17 + $0x28c] ss:$16 sps:$4 sm:$0xff]   ;;  %v2838_v49 = vld [vmem:[#allocation17 + $0x88] ss:$16 sps:$4 sm:$0xff]  }
 0x210   :  { %1336 = vmatpush2.bf16.msra.mxu0 %v2808_v50  ;;  %1377 = vmatpush2.bf16.msra.mxu1 %v2811_v51  ;;  %v2841_v50 = vld [vmem:[#allocation17 + $0x288] ss:$16 sps:$4 sm:$0xff]   ;;  %v2846_v51 = vld [vmem:[#allocation17 + $0x6c] ss:$16 sps:$4 sm:$0xff]  }
 0x211   :  { %1337 = vmatprep.subr.bf16.mxu0 %v2816_v52  ;;  %1378 = vmatprep.subr.bf16.mxu1 %v2819_v53  ;;  %v2849_v52 = vld [vmem:[#allocation17 + $0x26c] ss:$16 sps:$4 sm:$0xff]   ;;  %v2844_v53 = vld [vmem:[#allocation17 + $0x68] ss:$16 sps:$4 sm:$0xff]  }
 0x214   :  { %1338 = vmatpush2.bf16.msra.mxu0 %v2814_v54  ;;  %1379 = vmatpush2.bf16.msra.mxu1 %v2817_v55  ;;  %v2847_v54 = vld [vmem:[#allocation17 + $0x268] ss:$16 sps:$4 sm:$0xff]   ;;  %v2852_v55 = vld [vmem:[#allocation17 + $0x4c] ss:$16 sps:$4 sm:$0xff]  }
 0x215   :  { %1389 = vmatprep.subr.bf16.mxu0 %v2822_v56  ;;  %1430 = vmatprep.subr.bf16.mxu1 %v2825_v57  ;;  %v2855_v56 = vld [vmem:[#allocation17 + $0x24c] ss:$16 sps:$4 sm:$0xff]   ;;  %v2850_v57 = vld [vmem:[#allocation17 + $0x48] ss:$16 sps:$4 sm:$0xff]  }
 0x28f   :  { %v308_v60 = vpop.f32.mrf.mxu0  ;;  %v349_v61 = vpop.f32.mrf.mxu1 }
 0x291   :  { %v310_v62 = vpop.f32.mrf.mxu0  ;;  %v351_v63 = vpop.f32.mrf.mxu1 }
 0x293   :  { %v312_v2 = vpop.f32.mrf.mxu0  ;;  %v353_v3 = vpop.f32.mrf.mxu1 }
 0x294   :  { %v2864_v2 = vld [vmem:[#allocation17 + $0xc] ss:$16 sps:$4 sm:$0xff]  }
 0x295   :  { %v313_v7 = vpop.f32.mrf.mxu0  ;;  %v354_v8 = vpop.f32.mrf.mxu1  ;;  %v2867_v3 = vld [vmem:[#allocation17 + $0x20c] ss:$16 sps:$4 sm:$0xff]  }
 0x296   :  { %v2865_v7 = vld [vmem:[#allocation17 + $0x208] ss:$16 sps:$4 sm:$0xff]   ;;  %v2870_v8 = vld [vmem:[#allocation17 + $0x1ec] ss:$16 sps:$4 sm:$0xff]  }
 0x297   :  { %v435_v11 = vpop.f32.mrf.mxu0  ;;  %v476_v12 = vpop.f32.mrf.mxu1 }
 0x298   :  { %v436_v13 = vadd.f32 %v435_v11, %v308_v60  ;;  %v477_v14 = vadd.f32 %v476_v12, %v349_v61  ;;  %v2858_v60 = vld [vmem:[#allocation17 + $0x2c] ss:$16 sps:$4 sm:$0xff]   ;;  %v2871_v11 = vld [vmem:[#allocation17 + $0x3e8] ss:$16 sps:$4 sm:$0xff]  }
 0x299   :  { %v437_v17 = vpop.f32.mrf.mxu0  ;;  %v478_v18 = vpop.f32.mrf.mxu1  ;;  %v2861_v61 = vld [vmem:[#allocation17 + $0x22c] ss:$16 sps:$4 sm:$0xff]  }
 0x29a   :  { %v505_v19 = vadd.f32 %v488_v9, %v436_v13  ;;  %v507_v20 = vadd.f32 %v496_v10, %v477_v14  ;;  %v438_v21 = vadd.f32 %v437_v17, %v310_v62  ;;  %v479_v22 = vadd.f32 %v478_v18, %v351_v63  ;;  %v2856_v62 = vld [vmem:[#allocation17 + $0x28] ss:$16 sps:$4 sm:$0xff]   ;;  %v2873_v9 = vld [vmem:[#allocation17 + $0x3ec] ss:$16 sps:$4 sm:$0xff]  }
 0x29b   :  { %v439_v23 = vpop.f32.mrf.mxu0  ;;  %v480_v24 = vpop.f32.mrf.mxu1  ;;  %v2859_v63 = vld [vmem:[#allocation17 + $0x228] ss:$16 sps:$4 sm:$0xff]   ;;  %v2876_v12 = vld [vmem:[#allocation17 + $0x1cc] ss:$16 sps:$4 sm:$0xff]  }
 0x29c   :  { %v506_v25 = vadd.f32 %v492_v15, %v438_v21  ;;  %v508_v26 = vadd.f32 %v500_v16, %v479_v22  ;;  %v509_v27 = vmax.f32 %v505_v19, 0.0  ;;  %v511_v28 = vmax.f32 %v507_v20, 0.0  ;;  %v2868_v10 = vld [vmem:[#allocation17 + $0x1e8] ss:$16 sps:$4 sm:$0xff]   ;;  %v2879_v13 = vld [vmem:[#allocation17 + $0x3cc] ss:$16 sps:$4 sm:$0xff]  }
 0x29d   :  { %v440_v29 = vpop.f32.mrf.mxu0  ;;  %v481_v30 = vpop.f32.mrf.mxu1  ;;  %v2874_v14 = vld [vmem:[#allocation17 + $0x1c8] ss:$16 sps:$4 sm:$0xff]   ;;  %v2882_v16 = vld [vmem:[#allocation17 + $0x1ac] ss:$16 sps:$4 sm:$0xff]  }
 0x29e   :  { %v510_v31 = vmax.f32 %v506_v25, 0.0  ;;  %v512_v32 = vmax.f32 %v508_v26, 0.0  ;;  %v3449_v37 = vpack.c.bf16 %v509_v27, %v509_v27  ;;  %v3451_v38 = vpack.c.bf16 %v511_v28, %v511_v28  ;;  %v2877_v15 = vld [vmem:[#allocation17 + $0x3c8] ss:$16 sps:$4 sm:$0xff]   ;;  %v2885_v17 = vld [vmem:[#allocation17 + $0x3ac] ss:$16 sps:$4 sm:$0xff]  }
 0x29f   :  { %v2880_v18 = vld [vmem:[#allocation17 + $0x1a8] ss:$16 sps:$4 sm:$0xff]   ;;  %v2888_v20 = vld [vmem:[#allocation17 + $0x18c] ss:$16 sps:$4 sm:$0xff]  }
 0x2a0   :  { %v514_v33 = vpack.c.bf16 %v510_v31, %v510_v31  ;;  %v516_v34 = vpack.c.bf16 %v512_v32, %v512_v32  ;;  %v2883_v19 = vld [vmem:[#allocation17 + $0x3a8] ss:$16 sps:$4 sm:$0xff]   ;;  %v2891_v21 = vld [vmem:[#allocation17 + $0x38c] ss:$16 sps:$4 sm:$0xff]  }
 0x2a1   :  { %v2886_v22 = vld [vmem:[#allocation17 + $0x188] ss:$16 sps:$4 sm:$0xff]   ;;  %v2894_v24 = vld [vmem:[#allocation17 + $0x16c] ss:$16 sps:$4 sm:$0xff]  }
 0x2a2   :  { %1339 = vmatprep.mubr.bf16.mxu0 %v514_v33  ;;  %1380 = vmatprep.mubr.bf16.mxu1 %v516_v34  ;;  %v2889_v23 = vld [vmem:[#allocation17 + $0x388] ss:$16 sps:$4 sm:$0xff]   ;;  %v2897_v25 = vld [vmem:[#allocation17 + $0x36c] ss:$16 sps:$4 sm:$0xff]  }
 0x2a3   :  { %1340 = vmatmul.mubr.bf16.vlgmr.msra.gmra.mxu0 %v3449_v37  ;;  %1381 = vmatmul.mubr.bf16.vlgmr.msra.gmra.mxu1 %v3451_v38  ;;  %v2892_v26 = vld [vmem:[#allocation17 + $0x168] ss:$16 sps:$4 sm:$0xff]   ;;  %v2900_v28 = vld [vmem:[#allocation17 + $0x14c] ss:$16 sps:$4 sm:$0xff]  }
 0x2a4   :  { %1390 = vmatpush1.bf16.msra.mxu0 %v2820_v35  ;;  %1431 = vmatpush1.bf16.msra.mxu1 %v2823_v36  ;;  %v2895_v27 = vld [vmem:[#allocation17 + $0x368] ss:$16 sps:$4 sm:$0xff]   ;;  %v2903_v29 = vld [vmem:[#allocation17 + $0x34c] ss:$16 sps:$4 sm:$0xff]  }
 0x2a5   :  { %1421 = vmatprep.mubr.bf16.mxu0 %v514_v33  ;;  %1462 = vmatprep.mubr.bf16.mxu1 %v516_v34  ;;  %v2898_v30 = vld [vmem:[#allocation17 + $0x148] ss:$16 sps:$4 sm:$0xff]   ;;  %v2906_v32 = vld [vmem:[#allocation17 + $0x12c] ss:$16 sps:$4 sm:$0xff]  }
 0x2a6   :  { %1391 = vmatprep.subr.bf16.mxu0 %v2828_v39  ;;  %1432 = vmatprep.subr.bf16.mxu1 %v2831_v40  ;;  %v2901_v31 = vld [vmem:[#allocation17 + $0x348] ss:$16 sps:$4 sm:$0xff]   ;;  %v2909_v33 = vld [vmem:[#allocation17 + $0x32c] ss:$16 sps:$4 sm:$0xff]  }
 0x2a7   :  { %v2904_v34 = vld [vmem:[#allocation17 + $0x128] ss:$16 sps:$4 sm:$0xff]   ;;  %v2912_v36 = vld [vmem:[#allocation17 + $0x10c] ss:$16 sps:$4 sm:$0xff]  }
 0x2a8   :  { %1392 = vmatpush1.bf16.msra.mxu0 %v2826_v41  ;;  %1433 = vmatpush1.bf16.msra.mxu1 %v2829_v42  ;;  %v2907_v35 = vld [vmem:[#allocation17 + $0x328] ss:$16 sps:$4 sm:$0xff]   ;;  %v2915_v39 = vld [vmem:[#allocation17 + $0x30c] ss:$16 sps:$4 sm:$0xff]  }
 0x2a9   :  { %1393 = vmatprep.subr.bf16.mxu0 %v2834_v43  ;;  %1434 = vmatprep.subr.bf16.mxu1 %v2837_v44  ;;  %v2910_v40 = vld [vmem:[#allocation17 + $0x108] ss:$16 sps:$4 sm:$0xff]   ;;  %v2921_v44 = vld [vmem:[#allocation18 + $0x94] ss:$12 sps:$4 sm:$0xff]  }
 0x2aa   :  { %v2913_v41 = vld [vmem:[#allocation17 + $0x308] ss:$16 sps:$4 sm:$0xff]  }
 0x2ab   :  { %v2918_v42 = vld [vmem:[#allocation18 + $0xac] ss:$12 sps:$4 sm:$0xff]   ;;  %v2916_v43 = vld [vmem:[#allocation18 + $0xa8] ss:$12 sps:$4 sm:$0xff]  }
 0x2ac   :  { %1394 = vmatpush1.bf16.msra.mxu0 %v2832_v45  ;;  %1435 = vmatpush1.bf16.msra.mxu1 %v2835_v46  ;;  %v2919_v45 = vld [vmem:[#allocation18 + $0x90] ss:$12 sps:$4 sm:$0xff]  }
 0x2ad   :  { %1395 = vmatprep.subr.bf16.mxu0 %v2840_v47  ;;  %1436 = vmatprep.subr.bf16.mxu1 %v2843_v48  ;;  %v2924_v46 = vld [vmem:[#allocation18 + $0x7c] ss:$12 sps:$4 sm:$0xff]   ;;  %v2922_v47 = vld [vmem:[#allocation18 + $0x78] ss:$12 sps:$4 sm:$0xff]  }
 0x2ae   :  { %v2927_v48 = vld [vmem:[#allocation18 + $0x64] ss:$12 sps:$4 sm:$0xff]  }
 0x2b0   :  { %1396 = vmatpush1.bf16.msra.mxu0 %v2838_v49  ;;  %1437 = vmatpush1.bf16.msra.mxu1 %v2841_v50  ;;  %v2925_v49 = vld [vmem:[#allocation18 + $0x60] ss:$12 sps:$4 sm:$0xff]   ;;  %v2964_v50 = vld [vmem:[#allocation18 + $0x228] ss:$12 sps:$4 sm:$0xff]  }
 0x2b1   :  { %1397 = vmatprep.subr.bf16.mxu0 %v2846_v51  ;;  %1438 = vmatprep.subr.bf16.mxu1 %v2849_v52  ;;  %v2966_v51 = vld [vmem:[#allocation18 + $0x22c] ss:$12 sps:$4 sm:$0xff]  }
 0x2b2   :  { %v2930_v52 = vld [vmem:[#allocation18 + $0x4c] ss:$12 sps:$4 sm:$0xff]  }
 0x2b4   :  { %1398 = vmatpush1.bf16.msra.mxu0 %v2844_v53  ;;  %1439 = vmatpush1.bf16.msra.mxu1 %v2847_v54  ;;  %v2969_v53 = vld [vmem:[#allocation18 + $0x210] ss:$12 sps:$4 sm:$0xff]   ;;  %v2933_v54 = vld [vmem:[#allocation18 + $0x34] ss:$12 sps:$4 sm:$0xff]  }
 0x2b5   :  { %1399 = vmatprep.subr.bf16.mxu0 %v2852_v55  ;;  %1440 = vmatprep.subr.bf16.mxu1 %v2855_v56  ;;  %v2931_v55 = vld [vmem:[#allocation18 + $0x30] ss:$12 sps:$4 sm:$0xff]   ;;  %v2974_v56 = vld [vmem:[#allocation18 + $0x1f8] ss:$12 sps:$4 sm:$0xff]  }
 0x2b8   :  { %1400 = vmatpush1.bf16.msra.mxu0 %v2850_v57  ;;  %1441 = vmatpush1.bf16.msra.mxu1 %v2853_v58  ;;  %v2976_v57 = vld [vmem:[#allocation18 + $0x1fc] ss:$12 sps:$4 sm:$0xff]  }
 0x2b9   :  { %1401 = vmatprep.subr.bf16.mxu0 %v2858_v60  ;;  %1442 = vmatprep.subr.bf16.mxu1 %v2861_v61  ;;  %v2936_v58 = vld [vmem:[#allocation18 + $0x1c] ss:$12 sps:$4 sm:$0xff]   ;;  %v2934_v60 = vld [vmem:[#allocation18 + $0x18] ss:$12 sps:$4 sm:$0xff]   ;;  %v2979_v61 = vld [vmem:[#allocation18 + $0x1e0] ss:$12 sps:$4 sm:$0xff]  }
 0x2bc   :  { %1402 = vmatpush1.bf16.msra.mxu0 %v2856_v62  ;;  %1443 = vmatpush1.bf16.msra.mxu1 %v2859_v63  ;;  %v2981_v62 = vld [vmem:[#allocation18 + $0x1e4] ss:$12 sps:$4 sm:$0xff]  }
 0x2bd   :  { %1403 = vmatprep.subr.bf16.mxu0 %v2864_v2  ;;  %1444 = vmatprep.subr.bf16.mxu1 %v2867_v3  ;;  %v2939_v63 = vld [vmem:[#allocation18 + $0x4] ss:$12 sps:$4 sm:$0xff]   ;;  %v2937_v2 = vld [vmem:[#allocation18] ss:$12 sps:$4 sm:$0xff]   ;;  %v2984_v3 = vld [vmem:[#allocation18 + $0x1c8] ss:$12 sps:$4 sm:$0xff]  }
 0x2c0   :  { %1404 = vmatpush1.bf16.msra.mxu0 %v2862_v4  ;;  %1445 = vmatpush1.bf16.msra.mxu1 %v2865_v7  ;;  %v2986_v4 = vld [vmem:[#allocation18 + $0x1cc] ss:$12 sps:$4 sm:$0xff]  }
 0x2c1   :  { %1405 = vmatprep.subr.bf16.mxu0 %v2870_v8  ;;  %1446 = vmatprep.subr.bf16.mxu1 %v2873_v9  ;;  %v2942_v7 = vld [vmem:[#allocation18 + $0x16c] ss:$12 sps:$4 sm:$0xff]   ;;  %v2940_v8 = vld [vmem:[#allocation18 + $0x168] ss:$12 sps:$4 sm:$0xff]   ;;  %v2989_v9 = vld [vmem:[#allocation18 + $0x1b0] ss:$12 sps:$4 sm:$0xff]  }
 0x2c4   :  { %1406 = vmatpush2.bf16.msra.mxu0 %v2868_v10  ;;  %1447 = vmatpush2.bf16.msra.mxu1 %v2871_v11  ;;  %v2991_v10 = vld [vmem:[#allocation18 + $0x1b4] ss:$12 sps:$4 sm:$0xff]  }
 0x2c5   :  { %1407 = vmatprep.subr.bf16.mxu0 %v2876_v12  ;;  %1448 = vmatprep.subr.bf16.mxu1 %v2879_v13  ;;  %v2945_v11 = vld [vmem:[#allocation18 + $0x154] ss:$12 sps:$4 sm:$0xff]   ;;  %v2943_v12 = vld [vmem:[#allocation18 + $0x150] ss:$12 sps:$4 sm:$0xff]   ;;  %v2994_v13 = vld [vmem:[#allocation18 + $0x198] ss:$12 sps:$4 sm:$0xff]  }
 0x2c8   :  { %1408 = vmatpush2.bf16.msra.mxu0 %v2874_v14  ;;  %1449 = vmatpush2.bf16.msra.mxu1 %v2877_v15  ;;  %v2996_v14 = vld [vmem:[#allocation18 + $0x19c] ss:$12 sps:$4 sm:$0xff]  }
 0x2c9   :  { %1409 = vmatprep.subr.bf16.mxu0 %v2882_v16  ;;  %1450 = vmatprep.subr.bf16.mxu1 %v2885_v17  ;;  %v2948_v15 = vld [vmem:[#allocation18 + $0x13c] ss:$12 sps:$4 sm:$0xff]   ;;  %v2946_v16 = vld [vmem:[#allocation18 + $0x138] ss:$12 sps:$4 sm:$0xff]   ;;  %v2999_v17 = vld [vmem:[#allocation18 + $0x180] ss:$12 sps:$4 sm:$0xff]  }
 0x2cc   :  { %1410 = vmatpush2.bf16.msra.mxu0 %v2880_v18  ;;  %1451 = vmatpush2.bf16.msra.mxu1 %v2883_v19  ;;  %v3001_v18 = vld [vmem:[#allocation18 + $0x184] ss:$12 sps:$4 sm:$0xff]  }
 0x2cd   :  { %1411 = vmatprep.subr.bf16.mxu0 %v2888_v20  ;;  %1452 = vmatprep.subr.bf16.mxu1 %v2891_v21  ;;  %v2951_v19 = vld [vmem:[#allocation18 + $0x124] ss:$12 sps:$4 sm:$0xff]   ;;  %v2949_v20 = vld [vmem:[#allocation18 + $0x120] ss:$12 sps:$4 sm:$0xff]   ;;  %v3004_v21 = vld [vmem:[#allocation18 + $0x2e8] ss:$12 sps:$4 sm:$0xff]  }
 0x2d0   :  { %1412 = vmatpush2.bf16.msra.mxu0 %v2886_v22  ;;  %1453 = vmatpush2.bf16.msra.mxu1 %v2889_v23  ;;  %v3006_v22 = vld [vmem:[#allocation18 + $0x2ec] ss:$12 sps:$4 sm:$0xff]  }
 0x2d1   :  { %1413 = vmatprep.subr.bf16.mxu0 %v2894_v24  ;;  %1454 = vmatprep.subr.bf16.mxu1 %v2897_v25  ;;  %v2954_v23 = vld [vmem:[#allocation18 + $0x10c] ss:$12 sps:$4 sm:$0xff]   ;;  %v3007_v24 = vld [vmem:[#allocation18 + $0x2d0] ss:$12 sps:$4 sm:$0xff]   ;;  %v3009_v25 = vld [vmem:[#allocation18 + $0x2d4] ss:$12 sps:$4 sm:$0xff]  }
 0x2d4   :  { %1414 = vmatpush2.bf16.msra.mxu0 %v2892_v26  ;;  %1455 = vmatpush2.bf16.msra.mxu1 %v2895_v27  ;;  %v2952_v26 = vld [vmem:[#allocation18 + $0x108] ss:$12 sps:$4 sm:$0xff]  }
 0x2d5   :  { %1415 = vmatprep.subr.bf16.mxu0 %v2900_v28  ;;  %1456 = vmatprep.subr.bf16.mxu1 %v2903_v29  ;;  %v3012_v27 = vld [vmem:[#allocation18 + $0x2bc] ss:$12 sps:$4 sm:$0xff]   ;;  %v2957_v28 = vld [vmem:[#allocation18 + $0xf4] ss:$12 sps:$4 sm:$0xff]   ;;  %v3010_v29 = vld [vmem:[#allocation18 + $0x2b8] ss:$12 sps:$4 sm:$0xff]  }
 0x2d8   :  { %1416 = vmatpush2.bf16.msra.mxu0 %v2898_v30  ;;  %1457 = vmatpush2.bf16.msra.mxu1 %v2901_v31  ;;  %v2955_v30 = vld [vmem:[#allocation18 + $0xf0] ss:$12 sps:$4 sm:$0xff]  }
 0x2d9   :  { %1417 = vmatprep.subr.bf16.mxu0 %v2906_v32  ;;  %1458 = vmatprep.subr.bf16.mxu1 %v2909_v33  ;;  %v3015_v31 = vld [vmem:[#allocation18 + $0x2a4] ss:$12 sps:$4 sm:$0xff]   ;;  %v2960_v32 = vld [vmem:[#allocation18 + $0xdc] ss:$12 sps:$4 sm:$0xff]   ;;  %v3013_v33 = vld [vmem:[#allocation18 + $0x2a0] ss:$12 sps:$4 sm:$0xff]  }
 0x2dc   :  { %1418 = vmatpush2.bf16.msra.mxu0 %v2904_v34  ;;  %1459 = vmatpush2.bf16.msra.mxu1 %v2907_v35  ;;  %v2958_v34 = vld [vmem:[#allocation18 + $0xd8] ss:$12 sps:$4 sm:$0xff]  }
 0x2dd   :  { %1419 = vmatprep.subr.bf16.mxu0 %v2912_v36  ;;  %1460 = vmatprep.subr.bf16.mxu1 %v2915_v39  ;;  %v3018_v35 = vld [vmem:[#allocation18 + $0x28c] ss:$12 sps:$4 sm:$0xff]   ;;  %v2963_v36 = vld [vmem:[#allocation18 + $0xc4] ss:$12 sps:$4 sm:$0xff]   ;;  %v3016_v39 = vld [vmem:[#allocation18 + $0x288] ss:$12 sps:$4 sm:$0xff]  }
 0x2e0   :  { %1420 = vmatpush2.bf16.msra.mxu0 %v2910_v40  ;;  %1461 = vmatpush2.bf16.msra.mxu1 %v2913_v41  ;;  %v2961_v40 = vld [vmem:[#allocation18 + $0xc0] ss:$12 sps:$4 sm:$0xff]  }
 0x2e1   :  { %2136 = vmatprep.subr.bf16.mxu0 %v2918_v42  ;;  %2177 = vmatprep.subr.bf16.mxu1 %v2966_v51  ;;  %v3021_v41 = vld [vmem:[#allocation18 + $0x274] ss:$12 sps:$4 sm:$0xff]   ;;  %v2967_v42 = vld [vmem:[#allocation18 + $0x170] ss:$12 sps:$4 sm:$0xff]  }
 0x2e3   :  { %1422 = vmatmul.mubr.bf16.vlgmr.msra.gmra.mxu0 %v3449_v37  ;;  %1463 = vmatmul.mubr.bf16.vlgmr.msra.gmra.mxu1 %v3451_v38  ;;  %v2928_v37 = vld [vmem:[#allocation18 + $0x48] ss:$12 sps:$4 sm:$0xff]  }
 0x2e4   :  { %2137 = vmatpush1.bf16.msra.mxu0 %v2916_v43  ;;  %2178 = vmatpush1.bf16.msra.mxu1 %v2964_v50  ;;  %v2971_v38 = vld [vmem:[#allocation18 + $0x214] ss:$12 sps:$4 sm:$0xff]   ;;  %v3019_v43 = vld [vmem:[#allocation18 + $0x270] ss:$12 sps:$4 sm:$0xff]  }
 0x2e5   :  { %2138 = vmatprep.subr.bf16.mxu0 %v2921_v44  ;;  %2179 = vmatprep.subr.bf16.mxu1 %v2971_v38  ;;  %v3024_v44 = vld [vmem:[#allocation18 + $0x25c] ss:$12 sps:$4 sm:$0xff]  }
 0x2e8   :  { %2139 = vmatpush1.bf16.msra.mxu0 %v2919_v45  ;;  %2180 = vmatpush1.bf16.msra.mxu1 %v2969_v53  ;;  %v3022_v45 = vld [vmem:[#allocation18 + $0x258] ss:$12 sps:$4 sm:$0xff]  }
 0x2e9   :  { %2140 = vmatprep.subr.bf16.mxu0 %v2924_v46  ;;  %2181 = vmatprep.subr.bf16.mxu1 %v2976_v57  ;;  %v3027_v46 = vld [vmem:[#allocation18 + $0x244] ss:$12 sps:$4 sm:$0xff]  }
 0x2ec   :  { %2141 = vmatpush1.bf16.msra.mxu0 %v2922_v47  ;;  %2182 = vmatpush1.bf16.msra.mxu1 %v2974_v56  ;;  %v3025_v47 = vld [vmem:[#allocation18 + $0x240] ss:$12 sps:$4 sm:$0xff]  }
 0x2ed   :  { %2142 = vmatprep.subr.bf16.mxu0 %v2927_v48  ;;  %2183 = vmatprep.subr.bf16.mxu1 %v2981_v62  ;;  %v3028_v48 = vld [vmem:[#allocation18 + $0x2f0] ss:$12 sps:$4 sm:$0xff]  }
 0x2f0   :  { %2143 = vmatpush1.bf16.msra.mxu0 %v2925_v49  ;;  %2184 = vmatpush1.bf16.msra.mxu1 %v2979_v61  ;;  %v645_v49 = vld [vmem:[%s3493_s10] sm:$0xf] }
 0x2f1   :  { %2144 = vmatprep.subr.bf16.mxu0 %v2930_v52  ;;  %2185 = vmatprep.subr.bf16.mxu1 %v2986_v4  ;;  %v650_v50 = vrot.slane %v645_v49, %v3432_v0  ;;  %v654_v51 = vrot.slane %v645_v49, %v3441_v5  ;;  %v2968_v4 = vld [vmem:[#allocation18 + $0xb0] ss:$12 sps:$4 sm:$0xff]  }
 0x2f4   :  { %2145 = vmatpush1.bf16.msra.mxu0 %v2928_v37  ;;  %2186 = vmatpush1.bf16.msra.mxu1 %v2984_v3 }
 0x2f5   :  { %2146 = vmatprep.subr.bf16.mxu0 %v2933_v54  ;;  %2187 = vmatprep.subr.bf16.mxu1 %v2991_v10  ;;  %v2977_v10 = vld [vmem:[#allocation18 + $0x140] ss:$12 sps:$4 sm:$0xff]  }
 0x2f8   :  { %2147 = vmatpush1.bf16.msra.mxu0 %v2931_v55  ;;  %2188 = vmatpush1.bf16.msra.mxu1 %v2989_v9  ;;  %v2973_v9 = vld [vmem:[#allocation18 + $0x98] ss:$12 sps:$4 sm:$0xff]  }
 0x2f9   :  { %2148 = vmatprep.subr.bf16.mxu0 %v2936_v58  ;;  %2189 = vmatprep.subr.bf16.mxu1 %v2996_v14  ;;  %v2987_v14 = vld [vmem:[#allocation18 + $0x110] ss:$12 sps:$4 sm:$0xff]  }
 0x2fc   :  { %2149 = vmatpush1.bf16.msra.mxu0 %v2934_v60  ;;  %2190 = vmatpush1.bf16.msra.mxu1 %v2994_v13  ;;  %v2983_v13 = vld [vmem:[#allocation18 + $0x68] ss:$12 sps:$4 sm:$0xff]  }
 0x2fd   :  { %2150 = vmatprep.subr.bf16.mxu0 %v2939_v63  ;;  %2191 = vmatprep.subr.bf16.mxu1 %v3001_v18  ;;  %v2997_v18 = vld [vmem:[#allocation18 + $0xe0] ss:$12 sps:$4 sm:$0xff]  }
 0x300   :  { %2151 = vmatpush1.bf16.msra.mxu0 %v2937_v2  ;;  %2192 = vmatpush1.bf16.msra.mxu1 %v2999_v17  ;;  %v2993_v17 = vld [vmem:[#allocation18 + $0x38] ss:$12 sps:$4 sm:$0xff]  }
 0x301   :  { %2152 = vmatprep.subr.bf16.mxu0 %v2942_v7  ;;  %2193 = vmatprep.subr.bf16.mxu1 %v3006_v22  ;;  %v658_v22 = vrot.slane %v645_v49, %v3435_v1 }
 0x304   :  { %2153 = vmatpush2.bf16.msra.mxu0 %v2940_v8  ;;  %2194 = vmatpush2.bf16.msra.mxu1 %v3004_v21  ;;  %v2972_v8 = vld [vmem:[#allocation18 + $0x158] ss:$12 sps:$4 sm:$0xff]   ;;  %v3003_v21 = vld [vmem:[#allocation18 + $0x8] ss:$12 sps:$4 sm:$0xff]  }
 0x305   :  { %2154 = vmatprep.subr.bf16.mxu0 %v2945_v11  ;;  %2195 = vmatprep.subr.bf16.mxu1 %v3009_v25  ;;  %v2978_v11 = vld [vmem:[#allocation18 + $0x80] ss:$12 sps:$4 sm:$0xff]  }
 0x308   :  { %2155 = vmatpush2.bf16.msra.mxu0 %v2943_v12  ;;  %2196 = vmatpush2.bf16.msra.mxu1 %v3007_v24  ;;  %v2982_v12 = vld [vmem:[#allocation18 + $0x128] ss:$12 sps:$4 sm:$0xff]  }
 0x309   :  { %2156 = vmatprep.subr.bf16.mxu0 %v2948_v15  ;;  %2197 = vmatprep.subr.bf16.mxu1 %v3012_v27  ;;  %v2988_v15 = vld [vmem:[#allocation18 + $0x50] ss:$12 sps:$4 sm:$0xff]  }
 0x30c   :  { %2157 = vmatpush2.bf16.msra.mxu0 %v2946_v16  ;;  %2198 = vmatpush2.bf16.msra.mxu1 %v3010_v29  ;;  %v2992_v16 = vld [vmem:[#allocation18 + $0xf8] ss:$12 sps:$4 sm:$0xff]  }
 0x30d   :  { %2158 = vmatprep.subr.bf16.mxu0 %v2951_v19  ;;  %2199 = vmatprep.subr.bf16.mxu1 %v3015_v31  ;;  %v2998_v19 = vld [vmem:[#allocation18 + $0x20] ss:$12 sps:$4 sm:$0xff]  }
 0x310   :  { %2159 = vmatpush2.bf16.msra.mxu0 %v2949_v20  ;;  %2200 = vmatpush2.bf16.msra.mxu1 %v3013_v33  ;;  %v3002_v20 = vld [vmem:[#allocation18 + $0xc8] ss:$12 sps:$4 sm:$0xff]  }
 0x311   :  { %2160 = vmatprep.subr.bf16.mxu0 %v2954_v23  ;;  %2201 = vmatprep.subr.bf16.mxu1 %v3018_v35  ;;  %v662_v23 = vrot.slane %v645_v49, %v499_v6  ;;  %v3031_v6 = vld [vmem:[#allocation18 + $0x218] ss:$12 sps:$4 sm:$0xff]   ;;  %v3037_v49 = vld [vmem:[#allocation18 + $0x1d0] ss:$12 sps:$4 sm:$0xff]  }
 0x314   :  { %2161 = vmatpush2.bf16.msra.mxu0 %v2952_v26  ;;  %2202 = vmatpush2.bf16.msra.mxu1 %v3016_v39 }
 0x315   :  { %2162 = vmatprep.subr.bf16.mxu0 %v2957_v28  ;;  %2203 = vmatprep.subr.bf16.mxu1 %v3021_v41  ;;  %v3029_v41 = vld [vmem:[#allocation18 + $0x230] ss:$12 sps:$4 sm:$0xff]  }
 0x318   :  { %2163 = vmatpush2.bf16.msra.mxu0 %v2955_v30  ;;  %2204 = vmatpush2.bf16.msra.mxu1 %v3019_v43  ;;  %v3030_v43 = vld [vmem:[#allocation18 + $0x2d8] ss:$12 sps:$4 sm:$0xff]  }
 0x319   :  { %2164 = vmatprep.subr.bf16.mxu0 %v2960_v32  ;;  %2205 = vmatprep.subr.bf16.mxu1 %v3024_v44  ;;  %v3032_v44 = vld [vmem:[#allocation18 + $0x2c0] ss:$12 sps:$4 sm:$0xff]  }
 0x31c   :  { %2165 = vmatpush2.bf16.msra.mxu0 %v2958_v34  ;;  %2206 = vmatpush2.bf16.msra.mxu1 %v3022_v45  ;;  %v3033_v45 = vld [vmem:[#allocation18 + $0x200] ss:$12 sps:$4 sm:$0xff]  }
 0x31d   :  { %2166 = vmatprep.subr.bf16.mxu0 %v2963_v36  ;;  %2207 = vmatprep.subr.bf16.mxu1 %v3027_v46  ;;  %v3034_v46 = vld [vmem:[#allocation18 + $0x2a8] ss:$12 sps:$4 sm:$0xff]  }
 0x320   :  { %2167 = vmatpush2.bf16.msra.mxu0 %v2961_v40  ;;  %2208 = vmatpush2.bf16.msra.mxu1 %v3025_v47  ;;  %v3035_v47 = vld [vmem:[#allocation18 + $0x1e8] ss:$12 sps:$4 sm:$0xff]  }
 0x321   :  { %2649 = vmatprep.subr.bf16.mxu0 %v2967_v42  ;;  %2671 = vmatprep.subr.bf16.mxu1 %v3028_v48  ;;  %v3036_v48 = vld [vmem:[#allocation18 + $0x290] ss:$12 sps:$4 sm:$0xff]  }
 0x363   :  { %v1341_v52 = vpop.f32.mrf.mxu0  ;;  %v1382_v37 = vpop.f32.mrf.mxu1 }
 0x364   :  { %v1342_v53 = vadd.f32 %v1341_v52, %v650_v50  ;;  %v3038_v50 = vld [vmem:[#allocation18 + $0x278] ss:$12 sps:$4 sm:$0xff]   ;;  %v3040_v52 = vld [vmem:[#allocation18 + $0x260] ss:$12 sps:$4 sm:$0xff]  }
 0x365   :  { %v1343_v38 = vpop.f32.mrf.mxu0  ;;  %v1384_v54 = vpop.f32.mrf.mxu1 }
 0x366   :  { %v1383_v55 = vadd.f32 %v1382_v37, %v1342_v53  ;;  %v1344_v56 = vadd.f32 %v1343_v38, %v654_v51  ;;  %v3039_v51 = vld [vmem:[#allocation18 + $0x1b8] ss:$12 sps:$4 sm:$0xff]   ;;  %v3041_v37 = vld [vmem:[#allocation18 + $0x1a0] ss:$12 sps:$4 sm:$0xff]   ;;  %v3042_v53 = vld [vmem:[#allocation18 + $0x248] ss:$12 sps:$4 sm:$0xff]  }
 0x367   :  { %v1345_v57 = vpop.f32.mrf.mxu0  ;;  %v1386_v58 = vpop.f32.mrf.mxu1  ;;  %v3043_v38 = vld [vmem:[#allocation18 + $0x188] ss:$12 sps:$4 sm:$0xff]  }
 0x368   :  { %v1385_v60 = vadd.f32 %v1384_v54, %v1344_v56  ;;  %v1471_v61 = vmax.f32 %v1383_v55, 0.0 }
 0x369   :  { %v1346_v62 = vpop.f32.mrf.mxu0  ;;  %v1387_v63 = vpop.f32.mrf.mxu1 }
 0x36a   :  { %v1472_v2 = vmax.f32 %v1385_v60, 0.0  ;;  %v1475_v7 = vpack.c.bf16 %v1471_v61, %v1471_v61  ;;  %v1607_v63 = vld [vmem:[%s3495_s12] sm:$0x7]  ;;  %s3299_s12 = smov [#allocation20]  }
 0x36c   :  { %v1476_v3 = vpack.c.bf16 %v1472_v2, %v1472_v2  ;;  %v2301_v2 = vld [vmem:[%s3496_s13] sm:$0x7]  ;;  %s2386_s13 = sshll.u32 %s3299_s12, 4  ;;  %s2387_s13 = int_to_ptr.vmem [resolvable:$true] %s2386_s13 }
 0x36d   :  { %s3250_s0 = scalar_lea.vmem %s2387_s13, 16  ;;  %s3254_s21 = scalar_lea.vmem %s2387_s13, 32 }
 0x36e   :  { %2168 = vmatprep.mubr.bf16.mxu0 %v1476_v3  ;;  %p3251_p8 = scmp.ne.s32.totalorder %s2387_s13, %s3250_s0  ;;  %p3255_p9 = scmp.lt.s32.totalorder %s2387_s13, %s2387_s13 }
 0x36f   :  { %2169 = vmatmul.mubr.bf16.vlgmr.msra.gmra.mxu0 %v1475_v7  ;;  %p3256_p10 = scmp.lt.s32.totalorder %s3254_s21, %s3250_s0 }
 0x370   :  { %2650 = vmatpush3.bf16.msra.mxu0 %v2968_v4  ;;  %2250 = vmatprep.mubr.bf16.mxu0 %v1476_v3  ;;  %v1612_v3 = vrot.slane %v1607_v63, %v3432_v0  ;;  %v2302_v4 = vunpack.c.l.bf16 %v2301_v2 }
 0x371   :  { %2651 = vmatprep.subr.bf16.mxu0 %v2972_v8  ;;  %p3257_p11 = por %p3256_p10, %p3255_p9 }
 0x373   :  { %p3258_p12 = pnand %p3257_p11, %p3251_p8 }
 0x374   :  { %2652 = vmatpush3.bf16.msra.mxu0 %v2973_v9  ;;  %v2307_v9 = vrot.slane %v2302_v4, %v3432_v0 }
 0x375   :  { %2653 = vmatprep.subr.bf16.mxu0 %v2977_v10  ;;  %v2311_v10 = vrot.slane %v2302_v4, %v3435_v1 }
 0x378   :  { %2654 = vmatpush3.bf16.msra.mxu0 %v2978_v11 }
 0x379   :  { %2655 = vmatprep.subr.bf16.mxu0 %v2982_v12 }
 0x37c   :  { %2656 = vmatpush3.bf16.msra.mxu0 %v2983_v13 }
 0x37d   :  { %2657 = vmatprep.subr.bf16.mxu0 %v2987_v14 }
 0x380   :  { %2658 = vmatpush3.bf16.msra.mxu0 %v2988_v15 }
 0x381   :  { %2659 = vmatprep.subr.bf16.mxu0 %v2992_v16  ;;  %v2322_v16 = vrot.slane %v2307_v9, %v3432_v0 }
 0x384   :  { %2660 = vmatpush3.bf16.msra.mxu0 %v2993_v17 }
 0x385   :  { %2661 = vmatprep.subr.bf16.mxu0 %v2997_v18  ;;  %v2326_v18 = vrot.slane %v2311_v10, %v3432_v0 }
 0x388   :  { %2662 = vmatpush3.bf16.msra.mxu0 %v2998_v19 }
 0x389   :  { %2663 = vmatprep.subr.bf16.mxu0 %v3002_v20 }
 0x38c   :  { %2664 = vmatpush3.bf16.msra.mxu0 %v3003_v21 }
 0x38f   :  { %2251 = vmatmul.mubr.bf16.vlgmr.msra.gmra.mxu0 %v1475_v7  ;;  %v1616_v7 = vrot.slane %v1607_v63, %v3441_v5 }
 0x3a3   :  { %v1423_v24 = vpop.f32.mrf.mxu0  ;;  %v1464_v25 = vpop.f32.mrf.mxu1 }
 0x3a4   :  { %v1424_v26 = vadd.f32 %v1423_v24, %v658_v22  ;;  %v2314_v24 = vsub.s32 4, %v3429_v59 }
 0x3a5   :  { %v1425_v27 = vpop.f32.mrf.mxu0  ;;  %v1466_v28 = vpop.f32.mrf.mxu1 }
 0x3a6   :  { %v1465_v29 = vadd.f32 %v1464_v25, %v1424_v26  ;;  %v1426_v30 = vadd.f32 %v1425_v27, %v662_v23  ;;  %v1620_v25 = vrot.slane %v1607_v63, %v3435_v1 }
 0x3a7   :  { %v1427_v31 = vpop.f32.mrf.mxu0  ;;  %v1468_v32 = vpop.f32.mrf.mxu1 }
 0x3a8   :  { %v1467_v33 = vadd.f32 %v1466_v28, %v1426_v30  ;;  %v1473_v34 = vmax.f32 %v1465_v29, 0.0  ;;  %v2315_v28 = vrot.slane %v2302_v4, %v2314_v24 }
 0x3a9   :  { %v1428_v35 = vpop.f32.mrf.mxu0  ;;  %v1469_v36 = vpop.f32.mrf.mxu1 }
 0x3aa   :  { %v1474_v39 = vmax.f32 %v1467_v33, 0.0  ;;  %v1477_v42 = vpack.c.bf16 %v1473_v34, %v1473_v34  ;;  %v2330_v34 = vrot.slane %v2315_v28, %v3432_v0 }
 0x3ac   :  { %v1478_v40 = vpack.c.bf16 %v1474_v39, %v1474_v39 }
 0x3ae   :  { %2209 = vmatprep.mubr.bf16.mxu1 %v1478_v40 }
 0x3af   :  { %2210 = vmatmul.mubr.bf16.vlgmr.msra.gmra.mxu1 %v1477_v42 }
 0x3b0   :  { %2672 = vmatpush3.bf16.msra.mxu1 %v3029_v41  ;;  %2290 = vmatprep.mubr.bf16.mxu1 %v1478_v40  ;;  %v2648_v41 = vld [vmem:[#allocation2] ss:$0 sm:$0xff] }
 0x3b1   :  { %2673 = vmatprep.subr.bf16.mxu1 %v3030_v43 }
 0x3b4   :  { %2674 = vmatpush3.bf16.msra.mxu1 %v3031_v6 }
 0x3b5   :  { %2675 = vmatprep.subr.bf16.mxu1 %v3032_v44 }
 0x3b8   :  { %2676 = vmatpush3.bf16.msra.mxu1 %v3033_v45 }
 0x3b9   :  { %2677 = vmatprep.subr.bf16.mxu1 %v3034_v46 }
 0x3bc   :  { %2678 = vmatpush3.bf16.msra.mxu1 %v3035_v47 }
 0x3bd   :  { %2679 = vmatprep.subr.bf16.mxu1 %v3036_v48 }
 0x3c0   :  { %2680 = vmatpush3.bf16.msra.mxu1 %v3037_v49 }
 0x3c1   :  { %2681 = vmatprep.subr.bf16.mxu1 %v3038_v50 }
 0x3c4   :  { %2682 = vmatpush3.bf16.msra.mxu1 %v3039_v51 }
 0x3c5   :  { %2683 = vmatprep.subr.bf16.mxu1 %v3040_v52 }
 0x3c8   :  { %2684 = vmatpush3.bf16.msra.mxu1 %v3041_v37 }
 0x3c9   :  { %2685 = vmatprep.subr.bf16.mxu1 %v3042_v53 }
 0x3cc   :  { %2686 = vmatpush3.bf16.msra.mxu1 %v3043_v38 }
 0x3cf   :  { %2291 = vmatmul.mubr.bf16.vlgmr.msra.gmra.mxu1 %v1477_v42 }
 0x42f   :  { %v2170_v54 = vpop.f32.mrf.mxu0 }
 0x430   :  { %v2171_v8 = vadd.f32 %v2170_v54, %v1612_v3 }
 0x431   :  { %v2172_v55 = vpop.f32.mrf.mxu0 }
 0x432   :  { %v2173_v12 = vadd.f32 %v2172_v55, %v1616_v7 }
 0x433   :  { %v2174_v56 = vpop.f32.mrf.mxu0 }
 0x435   :  { %v2175_v57 = vpop.f32.mrf.mxu0 }
 0x44f   :  { %v2665_v58 = vpop.f32.mrf.mxu0 }
 0x451   :  { %v2666_v60 = vpop.f32.mrf.mxu0 }
 0x452   :  { %v2667_v26 = vadd.f32 %v2666_v60, %v2665_v58 }
 0x453   :  { %v2668_v61 = vpop.f32.mrf.mxu0 }
 0x454   :  { %v2253_v30 = vadd.f32 %v2667_v26, %v1620_v25 }
 0x455   :  { %v2669_v62 = vpop.f32.mrf.mxu0 }
 0x46f   :  { %v2211_v11 = vpop.f32.mrf.mxu1 }
 0x470   :  { %v2212_v13 = vadd.f32 %v2211_v11, %v2171_v8 }
 0x471   :  { %v2213_v14 = vpop.f32.mrf.mxu1 }
 0x472   :  { %v2298_v15 = vmax.f32 %v2212_v13, 0.0  ;;  %v2214_v17 = vadd.f32 %v2213_v14, %v2173_v12 }
 0x473   :  { %v2215_v19 = vpop.f32.mrf.mxu1 }
 0x474   :  { %v2299_v20 = vmax.f32 %v2214_v17, 0.0  ;;  %v2331_v22 = vmul.f32 %v2322_v16, %v2298_v15 }
 0x475   :  { %v2216_v21 = vpop.f32.mrf.mxu1 }
 0x476   :  { %v2332_v5 = vmul.f32 %v2326_v18, %v2299_v20 }
 0x478   :  { %v2334_v23 = vadd.f32 %v2332_v5, %v2331_v22 }
 0x48f   :  { %v2687_v27 = vpop.f32.mrf.mxu1 }
 0x491   :  { %v2688_v29 = vpop.f32.mrf.mxu1 }
 0x492   :  { %v2689_v31 = vadd.f32 %v2688_v29, %v2687_v27 }
 0x493   :  { %v2690_v32 = vpop.f32.mrf.mxu1 }
 0x494   :  { %v2293_v33 = vadd.f32 %v2689_v31, %v2253_v30 }
 0x495   :  { %v2691_v35 = vpop.f32.mrf.mxu1 }
 0x496   :  { %v2300_v36 = vmax.f32 %v2293_v33, 0.0 }
 0x498   :  { %v2333_v39 = vmul.f32 %v2330_v34, %v2300_v36 }
 0x49a   :  { %v2335_v40 = vadd.f32 %v2334_v23, %v2333_v39 }
 0x49c   :  { %2336 = vadd.xlane.f32.xlu0 %v2335_v40 }
 0x525   :  { %v2337_v42 = vpop.xlane.xlu0 %2336 }
 0x526   :  { %v2345_v59 = vadd.f32 %v2648_v41, %v2337_v42 }
 0x528   :  { %2346 = vxpose.xlu1.b32.start.end [1/1] (short) (narrow) %v2345_v59, 8 }
 0x5a4   :  { %v2362_v1 = vpop.trf.xlu1 }
 0x5a5   :  { %2379 = vst.msk [vmem:[#allocation20] sm:$0x1] %vm2378_vm3, %v2362_v1 }
 0x5a6   :  { %3261 = shalt.err (!%p3258_p12)
}
 0x5a7   :  { %2389 = dma.vmem_to_hbm [thread:$0]  %s2387_s13, 16, %s3498_s15, [#allocation5]  }
 0x5a8   :  { %3282 = dma.done.wait [#allocation5], 16  }
 0x5a9   :  { %3283 = vsyncadd [#allocation5], 4294967280 }
 0x5aa   :  { %2393 = vsyncpa [#allocation4], 1 }
 0x5ab   :  { %2394 = vsyncpa [#allocation7], 1 }
 0x5ac   :  { %2395 = vsyncpa [#allocation10], 1 }
 0x5ad   :  { %2396 = vsyncpa [#allocation13], 1 }
 0x5ae   :  { %2397 = vsyncpa [#allocation16], 1 }
 0x5af   :  { %2398 = vsyncpa [#allocation19], 1 }
 0x5b0   :  { %2399 = vsyncpa [#allocation5], 1 }

</bundles_post_ra>
